<compile_context>
chip_gen: v7x
topology: tpu7x:2x2x1
jax: 0.10.0
libtpu: 0.0.40
codegen_flags: <defaults>
</compile_context>

<pallas_src>
import numpy as np
import jax
import jax.numpy as jnp
from jax import lax
from jax.experimental import pallas as pl
from jax.experimental.pallas import tpu as pltpu

# Problem sizes consistent with the module's forward pass.
B, CIN, MID, COUT = 2, 4, 8, 16
D, H, W = 4, 16, 16
STRIDE = 2
HH, WH = H // STRIDE, W // STRIDE
NSP = D * HH * WH          # 256 output spatial points per batch
EPS = 1e-5


# ----------------------------------------------------------------------------
# Deterministic parameter initialization (shapes from ResidualConv3D.__init__).
# ----------------------------------------------------------------------------
def init_params(key, zero_init_last=True):
    ks = jax.random.split(key, 9)

    def conv_w(k, shape, fan_in):
        return jax.random.normal(k, shape, jnp.float32) / np.sqrt(fan_in)

    def bn_params(k, c):
        k1, k2, k3, k4 = jax.random.split(k, 4)
        gamma = jax.random.uniform(k1, (c,), jnp.float32, 0.5, 1.5)
        beta = jax.random.normal(k2, (c,), jnp.float32) * 0.1
        mean = jax.random.normal(k3, (c,), jnp.float32) * 0.1
        var = jax.random.uniform(k4, (c,), jnp.float32, 0.5, 1.5)
        return gamma, beta, mean, var

    p = {}
    p["w1"] = conv_w(ks[0], (MID, CIN, 1, 1, 1), CIN)       # conv1
    p["w2a"] = conv_w(ks[1], (MID, MID, 1, 1, 1), MID)      # conv2[0] (1x1x1)
    p["wdw"] = conv_w(ks[2], (MID, 1, 3, 3, 3), 27)         # conv2[1] depthwise
    p["w3"] = conv_w(ks[3], (COUT, MID, 1, 1, 1), MID)      # conv3
    p["wds"] = conv_w(ks[4], (COUT, CIN, 1, 1, 1), CIN)     # downsample conv
    p["g1"], p["be1"], p["m1"], p["v1"] = bn_params(ks[5], MID)
    p["g2"], p["be2"], p["m2"], p["v2"] = bn_params(ks[6], MID)
    p["g3"], p["be3"], p["m3"], p["v3"] = bn_params(ks[7], COUT)
    p["gds"], p["beds"], p["mds"], p["vds"] = bn_params(ks[8], COUT)
    if zero_init_last:  # zero_init_last(): bn3.weight = 0
        p["g3"] = jnp.zeros((COUT,), jnp.float32)
    return p


def fold_pack_params(p):
    """Fold eval-mode BN into conv weights; pack into one lane-dense slab.

    Slab layout (6, 16, 128), all segments start at (row 0, col 0):
      [0, :MID,  :CIN]  conv1 weight^T, bn1 scale folded
      [1, :MID,  :MID]  conv2[0] weight^T
      [2, :COUT, :MID]  conv3 weight^T, bn3 scale folded
      [3, :COUT, :CIN]  downsample weight^T, bnds scale folded
      [4, :MID,  :27]   depthwise taps (kd*9 + kh*3 + kw), bn2 scale folded
      [5, :MID,   0]    bn1 bias
      [5, :MID,   1]    bn2 bias
      [5, :COUT,  2]    bn3 bias + bnds bias
    """
    def fold(g, be, m, v):
        s = g / jnp.sqrt(v + EPS)
        return s, be - m * s

    s1, b1 = fold(p["g1"], p["be1"], p["m1"], p["v1"])
    s2, b2 = fold(p["g2"], p["be2"], p["m2"], p["v2"])
    s3, b3 = fold(p["g3"], p["be3"], p["m3"], p["v3"])
    sds, bds = fold(p["gds"], p["beds"], p["mds"], p["vds"])

    w1t = p["w1"][:, :, 0, 0, 0] * s1[:, None]                           # (MID, CIN)
    w2at = p["w2a"][:, :, 0, 0, 0]                                       # (MID, MID)
    wdw = (p["wdw"][:, 0] * s2[:, None, None, None]).reshape(MID, 27)    # (MID, 27)
    w3t = p["w3"][:, :, 0, 0, 0] * s3[:, None]                           # (COUT, MID)
    wdst = p["wds"][:, :, 0, 0, 0] * sds[:, None]                        # (COUT, CIN)
    b3ds = b3 + bds

    slab = jnp.zeros((6, 16, 128), jnp.float32)
    slab = slab.at[0, :MID, :CIN].set(w1t)
    slab = slab.at[1, :MID, :MID].set(w2at)
    slab = slab.at[2, :COUT, :MID].set(w3t)
    slab = slab.at[3, :COUT, :CIN].set(wdst)
    slab = slab.at[4, :MID, :27].set(wdw)
    slab = slab.at[5, :MID, 0].set(b1)
    slab = slab.at[5, :MID, 1].set(b2)
    slab = slab.at[5, :COUT, 2].set(b3ds)
    return slab


# ----------------------------------------------------------------------------
# Pure-JAX reference (mirrors the PyTorch forward, NCDHW) for validation.
# ----------------------------------------------------------------------------
def ref_forward(x, p):
    def conv(x, w, stride=(1, 1, 1), padding=((0, 0),) * 3, groups=1):
        return lax.conv_general_dilated(
            x, w, window_strides=stride, padding=list(padding),
            dimension_numbers=("NCDHW", "OIDHW", "NCDHW"),
            feature_group_count=groups, precision=lax.Precision.HIGHEST)

    def bn(x, g, be, m, v):
        shp = (1, -1, 1, 1, 1)
        inv = (g / jnp.sqrt(v + EPS)).reshape(shp)
        return (x - m.reshape(shp)) * inv + be.reshape(shp)

    sc = x
    h = conv(x, p["w1"])
    h = jax.nn.relu(bn(h, p["g1"], p["be1"], p["m1"], p["v1"]))
    h = conv(h, p["w2a"])
    h = conv(h, p["wdw"], stride=(1, STRIDE, STRIDE),
             padding=((1, 1), (1, 1), (1, 1)), groups=MID)
    h = jax.nn.relu(bn(h, p["g2"], p["be2"], p["m2"], p["v2"]))
    h = conv(h, p["w3"])
    h = bn(h, p["g3"], p["be3"], p["m3"], p["v3"])
    sc = conv(sc, p["wds"], stride=(1, STRIDE, STRIDE))
    sc = bn(sc, p["gds"], p["beds"], p["mds"], p["vds"])
    return jax.nn.relu(h + sc)


# ----------------------------------------------------------------------------
# Pallas kernel.
# ----------------------------------------------------------------------------
def _tree_sum(terms):
    """Pairwise tree sum — breaks serial dependence chains for the VALU."""
    terms = list(terms)
    while len(terms) > 1:
        nxt = [a + b for a, b in zip(terms[0::2], terms[1::2])]
        if len(terms) % 2:
            nxt.append(terms[-1])
        terms = nxt
    return terms[0]


def _kernel(x_ref, w_ref, o_ref):
    mid, cin, cout = MID, CIN, COUT
    L = B * NSP                  # lanes per parity phase (batch fused): 512
    HW = HH * WH                 # 64

    # Packed lane-dense weight slab (one small DMA) — static sub-slices.
    w1t = w_ref[0, :mid, :cin]           # conv1^T  (bn1 scale folded)   (8, 4)
    w2at = w_ref[1, :mid, :mid]          # conv2[0]^T                    (8, 8)
    w3t = w_ref[2, :cout, :mid]          # conv3^T  (bn3 scale folded)   (16, 8)
    wdst = w_ref[3, :cout, :cin]         # downsample^T (bnds folded)    (16, 4)
    wdw = w_ref[4, :mid, :32]            # depthwise taps (bn2 folded)   (8, 32)
    b1 = w_ref[5, :mid, 0:1]             # bn1 bias                      (8, 1)
    b2 = w_ref[5, :mid, 1:2]             # bn2 bias                      (8, 1)
    b3 = w_ref[5, :cout, 2:3]            # bn3 bias + bnds bias          (16, 1)

    xf = x_ref[...]                      # (Cin, 4*L) — lane-dense

    # conv1 (1x1) + bn1 + relu + conv2[0] (1x1): one matmul pair over all
    # 4 parity phases and both batches at once (S = 2048 lanes).
    h1 = jnp.dot(w1t, xf, preferred_element_type=jnp.float32)      # (mid, 4L)
    h1 = jnp.maximum(h1 + b1, 0.0)
    z = jnp.dot(w2at, h1, preferred_element_type=jnp.float32)      # (mid, 4L)

    # Aligned 512-lane parity-phase slices (phase index = hp*2 + wp).
    zph = [z[:, p * L:(p + 1) * L] for p in range(4)]

    # Per-lane output indices over the fused (batch, spatial) lane layout.
    # All strides are powers of two -> pure shift/and chains on the VPU.
    lane = lax.broadcasted_iota(jnp.int32, (mid, L), 1)
    s = lane & (NSP - 1)                 # spatial index within a batch
    d_i = s >> 6                         # depth index        (HW == 64)
    i_i = (s >> 3) & (HH - 1)            # half-res row index
    j_i = s & (WH - 1)                   # half-res col index
    ok_i = i_i >= 1
    ok_j = j_i >= 1
    ok_ij = jnp.logical_and(ok_i, ok_j)
    ok_dlo = d_i >= 1
    ok_dhi = d_i < D - 1

    # Depthwise 3x3x3, stride (1,2,2), padding 1 — factored form:
    # the 9 (kh, kw) taps are pre-rolled + i/j-masked ONCE (identical for all
    # kd); roll wraps (incl. across the fused batch boundary) land only in
    # masked lanes.
    def hw_tap(phase, shift, ok=None):
        r = zph[phase]
        if shift:
            r = pltpu.roll(r, shift % L, axis=1)   # want r[s] = zph[s - shift]
        if ok is not None:
            r = jnp.where(ok, r, 0.0)
        return r

    # p = kh*3 + kw.  kh/kw == 1 -> even phase, offset 0;
    #                 kh/kw == 0 -> odd phase, offset -1;  == 2 -> odd phase, 0.
    r = [
        hw_tap(3, WH + 1, ok_ij),   # (0,0): odd/odd,  row-1, col-1
        hw_tap(2, WH, ok_i),        # (0,1): odd/even, row-1
        hw_tap(3, WH, ok_i),        # (0,2): odd/odd,  row-1
        hw_tap(1, 1, ok_j),         # (1,0): even/odd, col-1
        hw_tap(0, 0),               # (1,1): even/even
        hw_tap(1, 0),               # (1,2): even/odd
        hw_tap(3, 1, ok_j),         # (2,0): odd/odd,  col-1
        hw_tap(2, 0),               # (2,1): odd/even
        hw_tap(3, 0),               # (2,2): odd/odd
    ]

    # Per-kd 9-term weighted partials (independent pairwise-tree sums), then a
    # single depth roll + depth mask per kd, combined at the end.
    def kd_partial(kd):
        base = kd * 9
        return _tree_sum(r[p] * wdw[:, base + p:base + p + 1] for p in range(9))

    p0 = kd_partial(0)                   # taps from depth d-1
    p1 = kd_partial(1)                   # taps from depth d
    p2 = kd_partial(2)                   # taps from depth d+1
    p0 = jnp.where(ok_dlo, pltpu.roll(p0, HW, axis=1), 0.0)
    p2 = jnp.where(ok_dhi, pltpu.roll(p2, (L - HW) % L, axis=1), 0.0)
    acc = p1 + (p0 + p2)                 # (mid, L)

    # bn2 bias + relu, then conv3+bn3 fused with the downsample shortcut.
    # Downsample 1x1 stride-(1,2,2) conv == even/even phase == first L lanes.
    # Two small dots summed instead of a sublane concat + one dot.
    y2 = jnp.maximum(acc + b2, 0.0)                                  # (mid, L)
    x_ee = x_ref[:, :L]                                              # (cin, L)
    out = (jnp.dot(w3t, y2, preferred_element_type=jnp.float32)
           + jnp.dot(wdst, x_ee, preferred_element_type=jnp.float32)
           + b3)
    out = jnp.maximum(out, 0.0)                                      # (cout, L)

    # Two lane-dense (cout, NSP) stores, directly in NCDHW block order.
    for b in range(B):
        o_ref[b] = out[:, b * NSP:(b + 1) * NSP]


def residual_conv3d_pallas(x_nchw, wslab):
    Bn, Cin, Dn, Hn, Wn = x_nchw.shape
    Hh, Wh = Hn // STRIDE, Wn // STRIDE
    nsp = Dn * Hh * Wh

    # Glue: stride-2 parity phase split, channels on sublanes, lane order =
    # (phase-major, batch, spatial):
    #   x_ph[c, (((hp*2+wp)*B + b)*nsp + (d*Hh + i)*Wh + j)] = x[b, c, d, 2i+hp, 2j+wp]
    x_ph = x_nchw.reshape(Bn, Cin, Dn, Hh, 2, Wh, 2)
    x_ph = x_ph.transpose(1, 4, 6, 0, 2, 3, 5).reshape(Cin, 4 * Bn * nsp)

    # Single invocation: no grid, whole arrays resident in VMEM
    # (total footprint ~110 KB — far under every generation's VMEM).
    out = pl.pallas_call(
        _kernel,
        out_shape=jax.ShapeDtypeStruct((Bn, COUT, nsp), jnp.float32),
    )(x_ph, wslab)

    # (B, Cout, D*Hh*Wh) -> NCDHW: a pure reshape, no transpose needed.
    return out.reshape(Bn, COUT, Dn, Hh, Wh)


if __name__ == "__main__":
    key = jax.random.PRNGKey(0)
    kx, kp = jax.random.split(key)
    x = jax.random.normal(kx, (B, CIN, D, H, W), jnp.float32)

    # zero_init_last=True is the faithful module init (bn3.weight == 0); the
    # False variant also numerically exercises the main conv branch.
    for zero_last in (True, False):
        p = init_params(kp, zero_init_last=zero_last)
        slab = fold_pack_params(p)
        out = residual_conv3d_pallas(x, slab)
        out = jax.block_until_ready(out)
        ref = ref_forward(x, p)
        err = np.max(np.abs(np.asarray(out) - np.asarray(ref)))
        assert np.allclose(np.asarray(out), np.asarray(ref), rtol=2e-4, atol=2e-4), \
            f"mismatch (zero_init_last={zero_last}): max abs err {err}"

    print("KERNEL_OK")
</pallas_src>

<mosaic_0001>
module attributes {stable_mosaic.version = 11 : i64} {
  func.func @_kernel(%arg0: memref<4x2048xf32, #tpu.memory_space<vmem>>, %arg1: memref<6x16x128xf32, #tpu.memory_space<vmem>>, %arg2: memref<2x16x256xf32, #tpu.memory_space<vmem>>) attributes {dimension_semantics = [], scalar_prefetch = 0 : i64, scratch_operands = 0 : i64, tpu.core_type = #tpu.core_type<tc>} {
    %c0 = arith.constant 0 : index
    %c0_0 = arith.constant 0 : index
    %c0_1 = arith.constant 0 : index
    %0 = vector.load %arg1[%c0, %c0_0, %c0_1] : memref<6x16x128xf32, #tpu.memory_space<vmem>>, vector<1x8x4xf32>
    %1 = vector.shape_cast %0 : vector<1x8x4xf32> to vector<8x4xf32>
    %c1 = arith.constant 1 : index
    %c0_2 = arith.constant 0 : index
    %c0_3 = arith.constant 0 : index
    %2 = vector.load %arg1[%c1, %c0_2, %c0_3] : memref<6x16x128xf32, #tpu.memory_space<vmem>>, vector<1x8x8xf32>
    %3 = vector.shape_cast %2 : vector<1x8x8xf32> to vector<8x8xf32>
    %c2 = arith.constant 2 : index
    %c0_4 = arith.constant 0 : index
    %c0_5 = arith.constant 0 : index
    %4 = vector.load %arg1[%c2, %c0_4, %c0_5] : memref<6x16x128xf32, #tpu.memory_space<vmem>>, vector<1x16x8xf32>
    %5 = vector.shape_cast %4 : vector<1x16x8xf32> to vector<16x8xf32>
    %c3 = arith.constant 3 : index
    %c0_6 = arith.constant 0 : index
    %c0_7 = arith.constant 0 : index
    %6 = vector.load %arg1[%c3, %c0_6, %c0_7] : memref<6x16x128xf32, #tpu.memory_space<vmem>>, vector<1x16x4xf32>
    %7 = vector.shape_cast %6 : vector<1x16x4xf32> to vector<16x4xf32>
    %c4 = arith.constant 4 : index
    %c0_8 = arith.constant 0 : index
    %c0_9 = arith.constant 0 : index
    %8 = vector.load %arg1[%c4, %c0_8, %c0_9] : memref<6x16x128xf32, #tpu.memory_space<vmem>>, vector<1x8x32xf32>
    %9 = vector.shape_cast %8 : vector<1x8x32xf32> to vector<8x32xf32>
    %c5 = arith.constant 5 : index
    %c0_10 = arith.constant 0 : index
    %c0_11 = arith.constant 0 : index
    %10 = vector.load %arg1[%c5, %c0_10, %c0_11] : memref<6x16x128xf32, #tpu.memory_space<vmem>>, vector<1x8x1xf32>
    %11 = vector.shape_cast %10 : vector<1x8x1xf32> to vector<8x1xf32>
    %c5_12 = arith.constant 5 : index
    %c0_13 = arith.constant 0 : index
    %c1_14 = arith.constant 1 : index
    %12 = vector.load %arg1[%c5_12, %c0_13, %c1_14] : memref<6x16x128xf32, #tpu.memory_space<vmem>>, vector<1x8x1xf32>
    %13 = vector.shape_cast %12 : vector<1x8x1xf32> to vector<8x1xf32>
    %c5_15 = arith.constant 5 : index
    %c0_16 = arith.constant 0 : index
    %c2_17 = arith.constant 2 : index
    %14 = vector.load %arg1[%c5_15, %c0_16, %c2_17] : memref<6x16x128xf32, #tpu.memory_space<vmem>>, vector<1x16x1xf32>
    %15 = vector.shape_cast %14 : vector<1x16x1xf32> to vector<16x1xf32>
    %c0_18 = arith.constant 0 : index
    %c0_19 = arith.constant 0 : index
    %16 = vector.load %arg0[%c0_18, %c0_19] : memref<4x2048xf32, #tpu.memory_space<vmem>>, vector<4x2048xf32>
    %cst = arith.constant dense<0.000000e+00> : vector<8x2048xf32>
    %17 = tpu.matmul %1, %16, %cst {dimension_numbers = #tpu.dot_dimension_numbers<[1], [0], [0], [1], [0, 0, 1, 1], [], []>} : vector<8x4xf32>, vector<4x2048xf32>, vector<8x2048xf32> -> vector<8x2048xf32>
    %18 = vector.broadcast %11 : vector<8x1xf32> to vector<8x2048xf32>
    %19 = arith.addf %17, %18 : vector<8x2048xf32>
    %cst_20 = arith.constant 0.000000e+00 : f32
    %20 = vector.broadcast %cst_20 : f32 to vector<8x2048xf32>
    %21 = arith.maximumf %19, %20 : vector<8x2048xf32>
    %cst_21 = arith.constant dense<0.000000e+00> : vector<8x2048xf32>
    %22 = tpu.matmul %3, %21, %cst_21 {dimension_numbers = #tpu.dot_dimension_numbers<[1], [0], [0], [1], [0, 0, 1, 1], [], []>} : vector<8x8xf32>, vector<8x2048xf32>, vector<8x2048xf32> -> vector<8x2048xf32>
    %23 = vector.extract_strided_slice %22 {offsets = [0, 0], sizes = [8, 512], strides = [1, 1]} : vector<8x2048xf32> to vector<8x512xf32>
    %24 = vector.extract_strided_slice %22 {offsets = [0, 512], sizes = [8, 512], strides = [1, 1]} : vector<8x2048xf32> to vector<8x512xf32>
    %25 = vector.extract_strided_slice %22 {offsets = [0, 1024], sizes = [8, 512], strides = [1, 1]} : vector<8x2048xf32> to vector<8x512xf32>
    %26 = vector.extract_strided_slice %22 {offsets = [0, 1536], sizes = [8, 512], strides = [1, 1]} : vector<8x2048xf32> to vector<8x512xf32>
    %27 = tpu.iota {dimensions = array<i32: 1>} : vector<8x512xi32>
    %c255_i32 = arith.constant 255 : i32
    %28 = vector.broadcast %c255_i32 : i32 to vector<8x512xi32>
    %29 = arith.andi %27, %28 : vector<8x512xi32>
    %c6_i32 = arith.constant 6 : i32
    %30 = vector.broadcast %c6_i32 : i32 to vector<8x512xi32>
    %31 = arith.shrsi %29, %30 : vector<8x512xi32>
    %c3_i32 = arith.constant 3 : i32
    %32 = vector.broadcast %c3_i32 : i32 to vector<8x512xi32>
    %33 = arith.shrsi %29, %32 : vector<8x512xi32>
    %c7_i32 = arith.constant 7 : i32
    %34 = vector.broadcast %c7_i32 : i32 to vector<8x512xi32>
    %35 = arith.andi %33, %34 : vector<8x512xi32>
    %c7_i32_22 = arith.constant 7 : i32
    %36 = vector.broadcast %c7_i32_22 : i32 to vector<8x512xi32>
    %37 = arith.andi %29, %36 : vector<8x512xi32>
    %c1_i32 = arith.constant 1 : i32
    %38 = vector.broadcast %c1_i32 : i32 to vector<8x512xi32>
    %39 = arith.cmpi sge, %35, %38 : vector<8x512xi32>
    %c1_i32_23 = arith.constant 1 : i32
    %40 = vector.broadcast %c1_i32_23 : i32 to vector<8x512xi32>
    %41 = arith.cmpi sge, %37, %40 : vector<8x512xi32>
    %42 = arith.andi %39, %41 : vector<8x512xi1>
    %c1_i32_24 = arith.constant 1 : i32
    %43 = vector.broadcast %c1_i32_24 : i32 to vector<8x512xi32>
    %44 = arith.cmpi sge, %31, %43 : vector<8x512xi32>
    %c3_i32_25 = arith.constant 3 : i32
    %45 = vector.broadcast %c3_i32_25 : i32 to vector<8x512xi32>
    %46 = arith.cmpi slt, %31, %45 : vector<8x512xi32>
    %c9_i32 = arith.constant 9 : i32
    %47 = tpu.dynamic_rotate %26 by %c9_i32 dim 1 : vector<8x512xf32>, i32 -> vector<8x512xf32>
    %cst_26 = arith.constant 0.000000e+00 : f32
    %48 = vector.broadcast %cst_26 : f32 to vector<8x512xf32>
    %49 = arith.select %42, %47, %48 : vector<8x512xi1>, vector<8x512xf32>
    %c8_i32 = arith.constant 8 : i32
    %50 = tpu.dynamic_rotate %25 by %c8_i32 dim 1 : vector<8x512xf32>, i32 -> vector<8x512xf32>
    %cst_27 = arith.constant 0.000000e+00 : f32
    %51 = vector.broadcast %cst_27 : f32 to vector<8x512xf32>
    %52 = arith.select %39, %50, %51 : vector<8x512xi1>, vector<8x512xf32>
    %c8_i32_28 = arith.constant 8 : i32
    %53 = tpu.dynamic_rotate %26 by %c8_i32_28 dim 1 : vector<8x512xf32>, i32 -> vector<8x512xf32>
    %cst_29 = arith.constant 0.000000e+00 : f32
    %54 = vector.broadcast %cst_29 : f32 to vector<8x512xf32>
    %55 = arith.select %39, %53, %54 : vector<8x512xi1>, vector<8x512xf32>
    %c1_i32_30 = arith.constant 1 : i32
    %56 = tpu.dynamic_rotate %24 by %c1_i32_30 dim 1 : vector<8x512xf32>, i32 -> vector<8x512xf32>
    %cst_31 = arith.constant 0.000000e+00 : f32
    %57 = vector.broadcast %cst_31 : f32 to vector<8x512xf32>
    %58 = arith.select %41, %56, %57 : vector<8x512xi1>, vector<8x512xf32>
    %c1_i32_32 = arith.constant 1 : i32
    %59 = tpu.dynamic_rotate %26 by %c1_i32_32 dim 1 : vector<8x512xf32>, i32 -> vector<8x512xf32>
    %cst_33 = arith.constant 0.000000e+00 : f32
    %60 = vector.broadcast %cst_33 : f32 to vector<8x512xf32>
    %61 = arith.select %41, %59, %60 : vector<8x512xi1>, vector<8x512xf32>
    %62 = vector.extract_strided_slice %9 {offsets = [0, 0], sizes = [8, 1], strides = [1, 1]} : vector<8x32xf32> to vector<8x1xf32>
    %63 = vector.broadcast %62 : vector<8x1xf32> to vector<8x512xf32>
    %64 = arith.mulf %49, %63 : vector<8x512xf32>
    %65 = vector.extract_strided_slice %9 {offsets = [0, 1], sizes = [8, 1], strides = [1, 1]} : vector<8x32xf32> to vector<8x1xf32>
    %66 = vector.broadcast %65 : vector<8x1xf32> to vector<8x512xf32>
    %67 = arith.mulf %52, %66 : vector<8x512xf32>
    %68 = vector.extract_strided_slice %9 {offsets = [0, 2], sizes = [8, 1], strides = [1, 1]} : vector<8x32xf32> to vector<8x1xf32>
    %69 = vector.broadcast %68 : vector<8x1xf32> to vector<8x512xf32>
    %70 = arith.mulf %55, %69 : vector<8x512xf32>
    %71 = vector.extract_strided_slice %9 {offsets = [0, 3], sizes = [8, 1], strides = [1, 1]} : vector<8x32xf32> to vector<8x1xf32>
    %72 = vector.broadcast %71 : vector<8x1xf32> to vector<8x512xf32>
    %73 = arith.mulf %58, %72 : vector<8x512xf32>
    %74 = vector.extract_strided_slice %9 {offsets = [0, 4], sizes = [8, 1], strides = [1, 1]} : vector<8x32xf32> to vector<8x1xf32>
    %75 = vector.broadcast %74 : vector<8x1xf32> to vector<8x512xf32>
    %76 = arith.mulf %23, %75 : vector<8x512xf32>
    %77 = vector.extract_strided_slice %9 {offsets = [0, 5], sizes = [8, 1], strides = [1, 1]} : vector<8x32xf32> to vector<8x1xf32>
    %78 = vector.broadcast %77 : vector<8x1xf32> to vector<8x512xf32>
    %79 = arith.mulf %24, %78 : vector<8x512xf32>
    %80 = vector.extract_strided_slice %9 {offsets = [0, 6], sizes = [8, 1], strides = [1, 1]} : vector<8x32xf32> to vector<8x1xf32>
    %81 = vector.broadcast %80 : vector<8x1xf32> to vector<8x512xf32>
    %82 = arith.mulf %61, %81 : vector<8x512xf32>
    %83 = vector.extract_strided_slice %9 {offsets = [0, 7], sizes = [8, 1], strides = [1, 1]} : vector<8x32xf32> to vector<8x1xf32>
    %84 = vector.broadcast %83 : vector<8x1xf32> to vector<8x512xf32>
    %85 = arith.mulf %25, %84 : vector<8x512xf32>
    %86 = vector.extract_strided_slice %9 {offsets = [0, 8], sizes = [8, 1], strides = [1, 1]} : vector<8x32xf32> to vector<8x1xf32>
    %87 = vector.broadcast %86 : vector<8x1xf32> to vector<8x512xf32>
    %88 = arith.mulf %26, %87 : vector<8x512xf32>
    %89 = arith.addf %64, %67 : vector<8x512xf32>
    %90 = arith.addf %70, %73 : vector<8x512xf32>
    %91 = arith.addf %76, %79 : vector<8x512xf32>
    %92 = arith.addf %82, %85 : vector<8x512xf32>
    %93 = arith.addf %89, %90 : vector<8x512xf32>
    %94 = arith.addf %91, %92 : vector<8x512xf32>
    %95 = arith.addf %93, %94 : vector<8x512xf32>
    %96 = arith.addf %95, %88 : vector<8x512xf32>
    %97 = vector.extract_strided_slice %9 {offsets = [0, 9], sizes = [8, 1], strides = [1, 1]} : vector<8x32xf32> to vector<8x1xf32>
    %98 = vector.broadcast %97 : vector<8x1xf32> to vector<8x512xf32>
    %99 = arith.mulf %49, %98 : vector<8x512xf32>
    %100 = vector.extract_strided_slice %9 {offsets = [0, 10], sizes = [8, 1], strides = [1, 1]} : vector<8x32xf32> to vector<8x1xf32>
    %101 = vector.broadcast %100 : vector<8x1xf32> to vector<8x512xf32>
    %102 = arith.mulf %52, %101 : vector<8x512xf32>
    %103 = vector.extract_strided_slice %9 {offsets = [0, 11], sizes = [8, 1], strides = [1, 1]} : vector<8x32xf32> to vector<8x1xf32>
    %104 = vector.broadcast %103 : vector<8x1xf32> to vector<8x512xf32>
    %105 = arith.mulf %55, %104 : vector<8x512xf32>
    %106 = vector.extract_strided_slice %9 {offsets = [0, 12], sizes = [8, 1], strides = [1, 1]} : vector<8x32xf32> to vector<8x1xf32>
    %107 = vector.broadcast %106 : vector<8x1xf32> to vector<8x512xf32>
    %108 = arith.mulf %58, %107 : vector<8x512xf32>
    %109 = vector.extract_strided_slice %9 {offsets = [0, 13], sizes = [8, 1], strides = [1, 1]} : vector<8x32xf32> to vector<8x1xf32>
    %110 = vector.broadcast %109 : vector<8x1xf32> to vector<8x512xf32>
    %111 = arith.mulf %23, %110 : vector<8x512xf32>
    %112 = vector.extract_strided_slice %9 {offsets = [0, 14], sizes = [8, 1], strides = [1, 1]} : vector<8x32xf32> to vector<8x1xf32>
    %113 = vector.broadcast %112 : vector<8x1xf32> to vector<8x512xf32>
    %114 = arith.mulf %24, %113 : vector<8x512xf32>
    %115 = vector.extract_strided_slice %9 {offsets = [0, 15], sizes = [8, 1], strides = [1, 1]} : vector<8x32xf32> to vector<8x1xf32>
    %116 = vector.broadcast %115 : vector<8x1xf32> to vector<8x512xf32>
    %117 = arith.mulf %61, %116 : vector<8x512xf32>
    %118 = vector.extract_strided_slice %9 {offsets = [0, 16], sizes = [8, 1], strides = [1, 1]} : vector<8x32xf32> to vector<8x1xf32>
    %119 = vector.broadcast %118 : vector<8x1xf32> to vector<8x512xf32>
    %120 = arith.mulf %25, %119 : vector<8x512xf32>
    %121 = vector.extract_strided_slice %9 {offsets = [0, 17], sizes = [8, 1], strides = [1, 1]} : vector<8x32xf32> to vector<8x1xf32>
    %122 = vector.broadcast %121 : vector<8x1xf32> to vector<8x512xf32>
    %123 = arith.mulf %26, %122 : vector<8x512xf32>
    %124 = arith.addf %99, %102 : vector<8x512xf32>
    %125 = arith.addf %105, %108 : vector<8x512xf32>
    %126 = arith.addf %111, %114 : vector<8x512xf32>
    %127 = arith.addf %117, %120 : vector<8x512xf32>
    %128 = arith.addf %124, %125 : vector<8x512xf32>
    %129 = arith.addf %126, %127 : vector<8x512xf32>
    %130 = arith.addf %128, %129 : vector<8x512xf32>
    %131 = arith.addf %130, %123 : vector<8x512xf32>
    %132 = vector.extract_strided_slice %9 {offsets = [0, 18], sizes = [8, 1], strides = [1, 1]} : vector<8x32xf32> to vector<8x1xf32>
    %133 = vector.broadcast %132 : vector<8x1xf32> to vector<8x512xf32>
    %134 = arith.mulf %49, %133 : vector<8x512xf32>
    %135 = vector.extract_strided_slice %9 {offsets = [0, 19], sizes = [8, 1], strides = [1, 1]} : vector<8x32xf32> to vector<8x1xf32>
    %136 = vector.broadcast %135 : vector<8x1xf32> to vector<8x512xf32>
    %137 = arith.mulf %52, %136 : vector<8x512xf32>
    %138 = vector.extract_strided_slice %9 {offsets = [0, 20], sizes = [8, 1], strides = [1, 1]} : vector<8x32xf32> to vector<8x1xf32>
    %139 = vector.broadcast %138 : vector<8x1xf32> to vector<8x512xf32>
    %140 = arith.mulf %55, %139 : vector<8x512xf32>
    %141 = vector.extract_strided_slice %9 {offsets = [0, 21], sizes = [8, 1], strides = [1, 1]} : vector<8x32xf32> to vector<8x1xf32>
    %142 = vector.broadcast %141 : vector<8x1xf32> to vector<8x512xf32>
    %143 = arith.mulf %58, %142 : vector<8x512xf32>
    %144 = vector.extract_strided_slice %9 {offsets = [0, 22], sizes = [8, 1], strides = [1, 1]} : vector<8x32xf32> to vector<8x1xf32>
    %145 = vector.broadcast %144 : vector<8x1xf32> to vector<8x512xf32>
    %146 = arith.mulf %23, %145 : vector<8x512xf32>
    %147 = vector.extract_strided_slice %9 {offsets = [0, 23], sizes = [8, 1], strides = [1, 1]} : vector<8x32xf32> to vector<8x1xf32>
    %148 = vector.broadcast %147 : vector<8x1xf32> to vector<8x512xf32>
    %149 = arith.mulf %24, %148 : vector<8x512xf32>
    %150 = vector.extract_strided_slice %9 {offsets = [0, 24], sizes = [8, 1], strides = [1, 1]} : vector<8x32xf32> to vector<8x1xf32>
    %151 = vector.broadcast %150 : vector<8x1xf32> to vector<8x512xf32>
    %152 = arith.mulf %61, %151 : vector<8x512xf32>
    %153 = vector.extract_strided_slice %9 {offsets = [0, 25], sizes = [8, 1], strides = [1, 1]} : vector<8x32xf32> to vector<8x1xf32>
    %154 = vector.broadcast %153 : vector<8x1xf32> to vector<8x512xf32>
    %155 = arith.mulf %25, %154 : vector<8x512xf32>
    %156 = vector.extract_strided_slice %9 {offsets = [0, 26], sizes = [8, 1], strides = [1, 1]} : vector<8x32xf32> to vector<8x1xf32>
    %157 = vector.broadcast %156 : vector<8x1xf32> to vector<8x512xf32>
    %158 = arith.mulf %26, %157 : vector<8x512xf32>
    %159 = arith.addf %134, %137 : vector<8x512xf32>
    %160 = arith.addf %140, %143 : vector<8x512xf32>
    %161 = arith.addf %146, %149 : vector<8x512xf32>
    %162 = arith.addf %152, %155 : vector<8x512xf32>
    %163 = arith.addf %159, %160 : vector<8x512xf32>
    %164 = arith.addf %161, %162 : vector<8x512xf32>
    %165 = arith.addf %163, %164 : vector<8x512xf32>
    %166 = arith.addf %165, %158 : vector<8x512xf32>
    %c64_i32 = arith.constant 64 : i32
    %167 = tpu.dynamic_rotate %96 by %c64_i32 dim 1 : vector<8x512xf32>, i32 -> vector<8x512xf32>
    %cst_34 = arith.constant 0.000000e+00 : f32
    %168 = vector.broadcast %cst_34 : f32 to vector<8x512xf32>
    %169 = arith.select %44, %167, %168 : vector<8x512xi1>, vector<8x512xf32>
    %c448_i32 = arith.constant 448 : i32
    %170 = tpu.dynamic_rotate %166 by %c448_i32 dim 1 : vector<8x512xf32>, i32 -> vector<8x512xf32>
    %cst_35 = arith.constant 0.000000e+00 : f32
    %171 = vector.broadcast %cst_35 : f32 to vector<8x512xf32>
    %172 = arith.select %46, %170, %171 : vector<8x512xi1>, vector<8x512xf32>
    %173 = arith.addf %169, %172 : vector<8x512xf32>
    %174 = arith.addf %131, %173 : vector<8x512xf32>
    %175 = vector.broadcast %13 : vector<8x1xf32> to vector<8x512xf32>
    %176 = arith.addf %174, %175 : vector<8x512xf32>
    %cst_36 = arith.constant 0.000000e+00 : f32
    %177 = vector.broadcast %cst_36 : f32 to vector<8x512xf32>
    %178 = arith.maximumf %176, %177 : vector<8x512xf32>
    %c0_37 = arith.constant 0 : index
    %c0_38 = arith.constant 0 : index
    %179 = vector.load %arg0[%c0_37, %c0_38] : memref<4x2048xf32, #tpu.memory_space<vmem>>, vector<4x512xf32>
    %cst_39 = arith.constant dense<0.000000e+00> : vector<16x512xf32>
    %180 = tpu.matmul %5, %178, %cst_39 {dimension_numbers = #tpu.dot_dimension_numbers<[1], [0], [0], [1], [0, 0, 1, 1], [], []>} : vector<16x8xf32>, vector<8x512xf32>, vector<16x512xf32> -> vector<16x512xf32>
    %cst_40 = arith.constant dense<0.000000e+00> : vector<16x512xf32>
    %181 = tpu.matmul %7, %179, %cst_40 {dimension_numbers = #tpu.dot_dimension_numbers<[1], [0], [0], [1], [0, 0, 1, 1], [], []>} : vector<16x4xf32>, vector<4x512xf32>, vector<16x512xf32> -> vector<16x512xf32>
    %182 = arith.addf %180, %181 : vector<16x512xf32>
    %183 = vector.broadcast %15 : vector<16x1xf32> to vector<16x512xf32>
    %184 = arith.addf %182, %183 : vector<16x512xf32>
    %cst_41 = arith.constant 0.000000e+00 : f32
    %185 = vector.broadcast %cst_41 : f32 to vector<16x512xf32>
    %186 = arith.maximumf %184, %185 : vector<16x512xf32>
    %187 = vector.extract_strided_slice %186 {offsets = [0, 0], sizes = [16, 256], strides = [1, 1]} : vector<16x512xf32> to vector<16x256xf32>
    %c0_42 = arith.constant 0 : index
    %c0_43 = arith.constant 0 : index
    %c0_44 = arith.constant 0 : index
    %188 = vector.load %arg2[%c0_42, %c0_43, %c0_44] : memref<2x16x256xf32, #tpu.memory_space<vmem>>, vector<1x16x256xf32>
    %189 = vector.shape_cast %188 : vector<1x16x256xf32> to vector<16x256xf32>
    %190 = vector.shape_cast %187 : vector<16x256xf32> to vector<1x16x256xf32>
    tpu.vector_store %arg2[%c0_42, %c0_43, %c0_44], %190 {strides = array<i32>} : memref<2x16x256xf32, #tpu.memory_space<vmem>>, vector<1x16x256xf32>,
    %191 = vector.extract_strided_slice %186 {offsets = [0, 256], sizes = [16, 256], strides = [1, 1]} : vector<16x512xf32> to vector<16x256xf32>
    %c1_45 = arith.constant 1 : index
    %c0_46 = arith.constant 0 : index
    %c0_47 = arith.constant 0 : index
    %192 = vector.load %arg2[%c1_45, %c0_46, %c0_47] : memref<2x16x256xf32, #tpu.memory_space<vmem>>, vector<1x16x256xf32>
    %193 = vector.shape_cast %192 : vector<1x16x256xf32> to vector<16x256xf32>
    %194 = vector.shape_cast %191 : vector<16x256xf32> to vector<1x16x256xf32>
    tpu.vector_store %arg2[%c1_45, %c0_46, %c0_47], %194 {strides = array<i32>} : memref<2x16x256xf32, #tpu.memory_space<vmem>>, vector<1x16x256xf32>,
    return
  }
}

</mosaic_0001>

<bundles_post_ra>
// kernel: tpu_custom_call.1
= control target key start
LH: loop header
LB: loop body
LE: loop exit
PB: predicated region body
PF: predicated region fallthrough
CT: control target
= control target key end

     0   :  { %7 = vsyncpa [#allocation3], 0  ;;  %s3115_s0 = inlined_call_operand.hbm [shape: f32[4,2048], index: 0, kind: input, shape index: {}]   ;;  %s3116_s1 = inlined_call_operand.hbm [shape: f32[6,16,128], index: 1, kind: input, shape index: {}]   ;;  %s3117_s2 = inlined_call_operand.hbm [shape: f32[2,16,256], index: 2, kind: output, shape index: {}]  }
   0x1   :  { %8 = vsyncpa [#allocation6], 0 }
   0x2   :  { %9 = vsyncpa [#allocation4], 0  ;;  %s2356_s9 = smov [#allocation2]   ;;  %s2357_s11 = smov [#allocation5]  }
   0x3   :  { %s16_s10 = sshll.u32 %s2356_s9, 4  ;;  %s25_s12 = sshll.u32 %s2357_s11, 4  ;;  %s17_s10 = int_to_ptr.vmem [resolvable:$true] %s16_s10  ;;  %s2409_s12 = int_to_ptr.vmem [resolvable:$true] %s25_s12 }
   0x4   :  { %s2284_s15 = scalar_lea.hbm %s3115_s0, 1024 }
   0x5   :  { %p2285_p0 = scmp.ne.s32.totalorder %s3115_s0, %s2284_s15  ;;  %p2288_p1 = scmp.lt.u32.totalorder %s2284_s15, %s3115_s0 }
   0x7   :  { %p2290_p2 = pnand %p2288_p1, %p2285_p0 }
   0x9   :  { %2293 = shalt.err (!%p2290_p2)
}
   0xa   :  { %s2294_s20 = scalar_lea.vmem %s17_s10, 1024  ;;  %p2299_p4 = scmp.lt.s32.totalorder %s17_s10, %s17_s10 }
   0xb   :  { %p2295_p3 = scmp.ne.s32.totalorder %s17_s10, %s2294_s20  ;;  %p2300_p5 = scmp.lt.s32.totalorder %s2294_s20, %s2294_s20 }
   0xd   :  { %p2301_p6 = por %p2300_p5, %p2299_p4 }
   0xf   :  { %p2302_p7 = pnand %p2301_p6, %p2295_p3 }
  0x11   :  { %2305 = shalt.err (!%p2302_p7)
}
  0x12   :  { %19 = dma.hbm_to_vmem [thread:$0]  %s3115_s0, 1024, %s17_s10, [#allocation3]  }
  0x13   :  { %s2306_s25 = scalar_lea.hbm %s3116_s1, 1536 }
  0x14   :  { %p2307_p8 = scmp.ne.s32.totalorder %s3116_s1, %s2306_s25  ;;  %p2310_p9 = scmp.lt.u32.totalorder %s2306_s25, %s3116_s1 }
  0x16   :  { %p2312_p10 = pnand %p2310_p9, %p2307_p8 }
  0x18   :  { %2315 = shalt.err (!%p2312_p10)
}
  0x19   :  { %s2316_s30 = scalar_lea.vmem %s2409_s12, 1536  ;;  %p2321_p12 = scmp.lt.s32.totalorder %s2409_s12, %s2409_s12 }
  0x1a   :  { %p2317_p11 = scmp.ne.s32.totalorder %s2409_s12, %s2316_s30  ;;  %p2322_p13 = scmp.lt.s32.totalorder %s2316_s30, %s2316_s30 }
  0x1c   :  { %p2323_p0 = por %p2322_p13, %p2321_p12 }
  0x1e   :  { %p2324_p1 = pnand %p2323_p0, %p2317_p11 }
  0x20   :  { %2327 = shalt.err (!%p2324_p1)
}
  0x21   :  { %s2358_s0 = smov 128   ;;  %s2359_s3 = smov 8  }
  0x22   :  { %31 = dma.hbm_to_vmem [thread:$0]  %s3116_s1, 1536, %s2409_s12, [#allocation6], %s2358_s0, %s2358_s0, %s2359_s3  }
  0x23   :  { %2350 = dma.done.wait [#allocation3], 1024  }
  0x24   :  { %2351 = vsyncadd [#allocation3], 4294966272 }
  0x25   :  { %2352 = dma.done.wait [#allocation6], 1536  }
  0x26   :  { %2353 = vsyncadd [#allocation6], 4294965760  ;;  %v3118_v0 = vmov 0.0   ;;  %v2361_v1 = vmov 0   ;;  %v52_v2 = vld [vmem:[#allocation2] sm:$0xff]  ;;  %vm85_vm0 = vcmask 1043456  }
  0x27   :  { %182 = vmatprep.mubr.f32.mxu0 %v3118_v0  ;;  %253 = vmatprep.mubr.f32.mxu1 %v3118_v0  ;;  %v53_v3 = vld [vmem:[#allocation2 + $0x8] sm:$0xff]  ;;  %v73_v4 = vcombine.high %v52_v2, %v52_v2  ;;  %v54_v6 = vld [vmem:[#allocation2 + $0x10] sm:$0xff]  ;;  %v55_v7 = vld [vmem:[#allocation2 + $0x18] sm:$0xff]  ;;  %vm3139_vm1 = vcmask 31744   ;;  %v2362_v21 = vmov 1   ;;  %v2363_v22 = vmov 3  }
  0x28   :  { %2244 = vset.pattern.permute.xlu0 %v2361_v1  ;;  %v74_v5 = vcombine.high %v53_v3, %v53_v3  ;;  %v38_v8 = vld [vmem:[#allocation5] sm:$0xff]  ;;  %v75_v9 = vcombine.high %v54_v6, %v54_v6  ;;  %v76_v10 = vcombine.high %v55_v7, %v55_v7  ;;  %v57_v12 = vld [vmem:[#allocation2 + $0x28] sm:$0xff]  ;;  %v58_v15 = vld [vmem:[#allocation2 + $0x30] sm:$0xff]  ;;  %2245 = vset.pattern.permute.xlu1 %v2362_v21  ;;  %v2364_v23 = vmov 2   ;;  %s2379_s1 = smov 1   ;;  %s2380_s6 = smov 9  }
  0x29   :  { %2154 = vmatprep.subr.msk.mxu0 %vm85_vm0, %v73_v4  ;;  %v56_v11 = vld [vmem:[#allocation2 + $0x20] sm:$0xff]  ;;  %v78_v14 = vcombine.high %v57_v12, %v57_v12  ;;  %v59_v16 = vld [vmem:[#allocation2 + $0x38] sm:$0xff]  ;;  %v79_v17 = vcombine.high %v58_v15, %v58_v15  ;;  %v2469_v19 = vld [vmem:[#allocation5 + $0x50] sm:$0xff]  ;;  %v2365_v24 = vmov 6   ;;  %v2366_v25 = vmov 4   ;;  %s2390_s7 = smov 64  }
  0x2a   :  { %2157 = vmatprep.subr.msk.mxu1 %vm85_vm0, %v74_v5  ;;  %2155 = vmatpush1.msk.msra.mxu0 %vm85_vm0, %v52_v2  ;;  %v77_v13 = vcombine.high %v56_v11, %v56_v11  ;;  %v80_v18 = vcombine.high %v59_v16, %v59_v16  ;;  %3161 = vst [vmem:[#allocation11_spill] sm:$0xff] %v2469_v19  ;;  %v2477_v20 = vld [vmem:[#allocation5 + $0x40] sm:$0xff]  ;;  %v2367_v26 = vmov 19   ;;  %v2368_v27 = vmov 5   ;;  %v40_v55 = vld [vmem:[#allocation5 + $0x10] sm:$0xff]  ;;  %s2391_s8 = smov [#allocation7]  }
  0x2b   :  { %2158 = vmatpush1.msk.msra.mxu1 %vm85_vm0, %v53_v3  ;;  %2156 = vmatmul.mubr.msk.f32.vlgmr.msra.gmra.mrb[0].mxu0 %vm3139_vm1, %v38_v8  ;;  %v2369_v28 = vmov 22   ;;  %v2370_v29 = vmov 7   ;;  %v2371_v30 = vmov 25   ;;  %v2372_v31 = vmov 18   ;;  %s2141_s9 = sshll.u32 %s2391_s8, 4  ;;  %s2142_s9 = int_to_ptr.vmem [resolvable:$true] %s2141_s9 }
  0x2c   :  { %2159 = vmatmul.mubr.msk.f32.vlgmr.msra.gmra.mrb[0].mxu1 %vm3139_vm1, %v38_v8  ;;  %2160 = vmatprep.subr.msk.mxu0 %vm85_vm0, %v75_v9  ;;  %v2373_v32 = vmov 20   ;;  %v2374_v33 = vmov 21   ;;  %v2375_v34 = vmov 23   ;;  %v2376_v35 = vmov 24   ;;  %s2328_s10 = scalar_lea.vmem %s2142_s9, 1024  ;;  %p2333_p3 = scmp.lt.s32.totalorder %s2142_s9, %s2142_s9 }
  0x2d   :  { %2163 = vmatprep.subr.msk.mxu1 %vm85_vm0, %v76_v10  ;;  %2161 = vmatpush1.msk.msra.mxu0 %vm85_vm0, %v54_v6  ;;  %vm3138_vm2 = vcmask 64512   ;;  %p2329_p2 = scmp.ne.s32.totalorder %s2142_s9, %s2328_s10  ;;  %p2334_p4 = scmp.lt.s32.totalorder %s2328_s10, %s2328_s10 }
  0x2e   :  { %324 = vmatprep.mubr.f32.mxu0 %v3118_v0  ;;  %2164 = vmatpush1.msk.msra.mxu1 %vm85_vm0, %v55_v7 }
  0x2f   :  { %395 = vmatprep.mubr.f32.mxu1 %v3118_v0  ;;  %2162 = vmatmul.mubr.msk.f32.vlgmr.msra.gmra.mrb[2].mxu0 %vm3139_vm1, %v38_v8  ;;  %p2335_p5 = por %p2334_p4, %p2333_p3 }
  0x30   :  { %2165 = vmatmul.mubr.msk.f32.vlgmr.msra.gmra.mrb[2].mxu1 %vm3139_vm1, %v38_v8  ;;  %2166 = vmatprep.subr.msk.mxu0 %vm85_vm0, %v77_v13 }
  0x31   :  { %2169 = vmatprep.subr.msk.mxu1 %vm85_vm0, %v78_v14  ;;  %2167 = vmatpush1.msk.msra.mxu0 %vm85_vm0, %v56_v11  ;;  %p2336_p6 = pnand %p2335_p5, %p2329_p2 }
  0x32   :  { %466 = vmatprep.mubr.f32.mxu0 %v3118_v0  ;;  %2170 = vmatpush1.msk.msra.mxu1 %vm85_vm0, %v57_v12 }
  0x33   :  { %537 = vmatprep.mubr.f32.mxu1 %v3118_v0  ;;  %2168 = vmatmul.mubr.msk.f32.vlgmr.msra.gmra.mrb[4].mxu0 %vm3139_vm1, %v38_v8 }
  0x34   :  { %2171 = vmatmul.mubr.msk.f32.vlgmr.msra.gmra.mrb[4].mxu1 %vm3139_vm1, %v38_v8  ;;  %2172 = vmatprep.subr.msk.mxu0 %vm85_vm0, %v79_v17 }
  0x35   :  { %2175 = vmatprep.subr.msk.mxu1 %vm85_vm0, %v80_v18  ;;  %2173 = vmatpush1.msk.msra.mxu0 %vm85_vm0, %v58_v15 }
  0x36   :  { %608 = vmatprep.mubr.f32.mxu0 %v3118_v0  ;;  %2176 = vmatpush1.msk.msra.mxu1 %vm85_vm0, %v59_v16 }
  0x37   :  { %679 = vmatprep.mubr.f32.mxu1 %v3118_v0  ;;  %2174 = vmatmul.mubr.msk.f32.vlgmr.msra.gmra.mrb[6].mxu0 %vm3139_vm1, %v38_v8 }
  0x38   :  { %2177 = vmatmul.mubr.msk.f32.vlgmr.msra.gmra.mrb[6].mxu1 %vm3139_vm1, %v38_v8  ;;  %62 = vperm.xlu0 %2244, %v2469_v19  }
  0x39   :  { %770 = vmatprep.mubr.f32.mxu0 %v3118_v0  ;;  %841 = vmatprep.mubr.f32.mxu1 %v3118_v0 }
  0x3a   :  { %1412 = vperm.xlu1 %2245, %v2477_v20  }
  0x3c   :  { %1404 = vperm.xlu0 %2244, %v2477_v20  }
  0x3e   :  { %2246 = vset.pattern.permute.xlu1 %v2364_v23 }
  0x3f   :  { %1420 = vperm.xlu1 %2246, %v2477_v20  }
  0x40   :  { %2247 = vset.pattern.permute.xlu0 %v2363_v22 }
  0x41   :  { %1428 = vperm.xlu0 %2247, %v2477_v20  }
  0x43   :  { %2248 = vset.pattern.permute.xlu1 %v2366_v25 }
  0x44   :  { %1436 = vperm.xlu1 %2248, %v2477_v20  }
  0x45   :  { %2250 = vset.pattern.permute.xlu0 %v2365_v24 }
  0x46   :  { %1452 = vperm.xlu0 %2250, %v2477_v20  }
  0x48   :  { %2249 = vset.pattern.permute.xlu1 %v2368_v27  ;;  %v2377_v27 = vmov 8  }
  0x49   :  { %1444 = vperm.xlu1 %2249, %v2477_v20  }
  0x4a   :  { %2253 = vset.pattern.permute.xlu0 %v2367_v26 }
  0x4b   :  { %1620 = vperm.xlu0 %2253, %v2477_v20  }
  0x4d   :  { %2251 = vset.pattern.permute.xlu1 %v2370_v29 }
  0x4e   :  { %1460 = vperm.xlu1 %2251, %v2477_v20  }
  0x4f   :  { %2256 = vset.pattern.permute.xlu0 %v2369_v28  ;;  %v2378_v28 = vmov 26  }
  0x50   :  { %1644 = vperm.xlu0 %2256, %v2477_v20  }
  0x52   :  { %2252 = vset.pattern.permute.xlu1 %v2372_v31 }
  0x53   :  { %1612 = vperm.xlu1 %2252, %v2477_v20  }
  0x54   :  { %2259 = vset.pattern.permute.xlu0 %v2371_v30 }
  0x55   :  { %1668 = vperm.xlu0 %2259, %v2477_v20  }
  0x57   :  { %2254 = vset.pattern.permute.xlu1 %v2373_v32 }
  0x58   :  { %1628 = vperm.xlu1 %2254, %v2477_v20  }
  0x59   :  { %2260 = vset.pattern.permute.xlu0 %v2377_v27  ;;  %v2384_v27 = vmov 16  }
  0x5c   :  { %2255 = vset.pattern.permute.xlu1 %v2374_v33 }
  0x5d   :  { %1636 = vperm.xlu1 %2255, %v2477_v20  }
  0x61   :  { %2257 = vset.pattern.permute.xlu1 %v2375_v34 }
  0x62   :  { %1652 = vperm.xlu1 %2257, %v2477_v20  }
  0x66   :  { %2258 = vset.pattern.permute.xlu1 %v2376_v35 }
  0x67   :  { %1660 = vperm.xlu1 %2258, %v2477_v20  }
  0x6b   :  { %2261 = vset.pattern.permute.xlu1 %v2378_v28  ;;  %v2385_v28 = vmov 11  }
  0xb7   :  { %v63_v36 = vpop.permute.xlu0 %62 }
  0xb9   :  { %v2514_v29 = vpop.permute.xlu1 %1412 }
  0xbb   :  { %v2518_v33 = vpop.permute.xlu0 %1404 }
  0xbe   :  { %v2516_v30 = vpop.permute.xlu1 %1420 }
  0xc0   :  { %v2522_v35 = vpop.permute.xlu0 %1428 }
  0xc3   :  { %v1437_v31 = vpop.permute.xlu1 %1436 }
  0xc8   :  { %v1445_v32 = vpop.permute.xlu1 %1444 }
  0xcd   :  { %v2520_v34 = vpop.permute.xlu1 %1460 }
  0xfe   :  { %v184_v37 = vpop.f32.mrb[0].mxu0 }
  0xff   :  { %v255_v38 = vpop.f32.mrb[0].mxu1  ;;  %v185_v39 = vadd.f32 %v184_v37, %v63_v36  ;;  %v186_v41 = vpop.f32.mrb[1].mxu0 }
 0x100   :  { %v256_v40 = vadd.f32 %v255_v38, %v63_v36  ;;  %v257_v42 = vpop.f32.mrb[1].mxu1  ;;  %v187_v43 = vadd.f32 %v186_v41, %v63_v36  ;;  %v2526_v37 = vpop.permute.xlu0 %1452 }
 0x101   :  { %v258_v44 = vadd.f32 %v257_v42, %v63_v36  ;;  %v686_v50 = vmax.f32 %v185_v39, 0.0 }
 0x102   :  { %v688_v45 = vmax.f32 %v256_v40, 0.0  ;;  %v687_v46 = vmax.f32 %v187_v43, 0.0  ;;  %v326_v48 = vpop.f32.mrb[2].mxu0 }
 0x103   :  { %v689_v47 = vmax.f32 %v258_v44, 0.0  ;;  %v397_v49 = vpop.f32.mrb[2].mxu1  ;;  %v327_v51 = vadd.f32 %v326_v48, %v63_v36  ;;  %v328_v53 = vpop.f32.mrb[3].mxu0 }
 0x104   :  { %v398_v52 = vadd.f32 %v397_v49, %v63_v36  ;;  %v399_v54 = vpop.f32.mrb[3].mxu1  ;;  %v329_v56 = vadd.f32 %v328_v53, %v63_v36  ;;  %706 = vmatprep.subr.mxu0 %v687_v46  ;;  %v2530_v39 = vpop.permute.xlu0 %1620 }
 0x105   :  { %v400_v57 = vadd.f32 %v399_v54, %v63_v36  ;;  %777 = vmatprep.subr.mxu1 %v689_v47  ;;  %707 = vmatpush1.msra.mxu0 %v686_v50  ;;  %v690_v62 = vmax.f32 %v327_v51, 0.0  ;;  %3162 = vst [vmem:[#allocation12_spill] sm:$0xff] %v2530_v39 }
 0x106   :  { %778 = vmatpush1.msra.mxu1 %v688_v45  ;;  %v691_v58 = vmax.f32 %v329_v56, 0.0  ;;  %v468_v60 = vpop.f32.mrb[4].mxu0  ;;  %2178 = vmatmul.mubr.msk.f32.vlgmr.msra.gmra.mrb[8].mxu0 %vm3138_vm2, %v40_v55  ;;  %v692_v63 = vmax.f32 %v398_v52, 0.0 }
 0x107   :  { %v693_v59 = vmax.f32 %v400_v57, 0.0  ;;  %v539_v61 = vpop.f32.mrb[4].mxu1  ;;  %2179 = vmatmul.mubr.msk.f32.vlgmr.msra.gmra.mrb[8].mxu1 %vm3138_vm2, %v40_v55  ;;  %v469_v1 = vadd.f32 %v468_v60, %v63_v36  ;;  %v470_v3 = vpop.f32.mrb[5].mxu0  ;;  %912 = vmatprep.mubr.f32.mxu0 %v3118_v0 }
 0x108   :  { %v540_v2 = vadd.f32 %v539_v61, %v63_v36  ;;  %v541_v4 = vpop.f32.mrb[5].mxu1  ;;  %983 = vmatprep.mubr.f32.mxu1 %v3118_v0  ;;  %v471_v5 = vadd.f32 %v470_v3, %v63_v36  ;;  %848 = vmatprep.subr.mxu0 %v691_v58  ;;  %v1645_v41 = vpop.permute.xlu0 %1644 }
 0x109   :  { %v542_v6 = vadd.f32 %v541_v4, %v63_v36  ;;  %919 = vmatprep.subr.mxu1 %v693_v59  ;;  %849 = vmatpush1.msra.mxu0 %v690_v62  ;;  %v694_v11 = vmax.f32 %v469_v1, 0.0 }
 0x10a   :  { %920 = vmatpush1.msra.mxu1 %v692_v63  ;;  %v695_v7 = vmax.f32 %v471_v5, 0.0  ;;  %v610_v9 = vpop.f32.mrb[6].mxu0  ;;  %2180 = vmatmul.mubr.msk.f32.vlgmr.msra.gmra.mrb[10].mxu0 %vm3138_vm2, %v40_v55  ;;  %v696_v12 = vmax.f32 %v540_v2, 0.0 }
 0x10b   :  { %v697_v8 = vmax.f32 %v542_v6, 0.0  ;;  %v681_v10 = vpop.f32.mrb[6].mxu1  ;;  %2181 = vmatmul.mubr.msk.f32.vlgmr.msra.gmra.mrb[10].mxu1 %vm3138_vm2, %v40_v55  ;;  %v611_v13 = vadd.f32 %v610_v9, %v63_v36  ;;  %v612_v15 = vpop.f32.mrb[7].mxu0  ;;  %1054 = vmatprep.mubr.f32.mxu0 %v3118_v0 }
 0x10c   :  { %v682_v14 = vadd.f32 %v681_v10, %v63_v36  ;;  %v683_v16 = vpop.f32.mrb[7].mxu1  ;;  %1125 = vmatprep.mubr.f32.mxu1 %v3118_v0  ;;  %v613_v17 = vadd.f32 %v612_v15, %v63_v36  ;;  %990 = vmatprep.subr.mxu0 %v695_v7 }
 0x10d   :  { %v684_v18 = vadd.f32 %v683_v16, %v63_v36  ;;  %1061 = vmatprep.subr.mxu1 %v697_v8  ;;  %991 = vmatpush1.msra.mxu0 %v694_v11  ;;  %v698_v25 = vmax.f32 %v611_v13, 0.0  ;;  %v2524_v36 = vpop.permute.xlu1 %1612 }
 0x10e   :  { %1062 = vmatpush1.msra.mxu1 %v696_v12  ;;  %v699_v22 = vmax.f32 %v613_v17, 0.0  ;;  %2182 = vmatmul.mubr.msk.f32.vlgmr.msra.gmra.mrb[12].mxu0 %vm3138_vm2, %v40_v55  ;;  %v700_v26 = vmax.f32 %v682_v14, 0.0 }
 0x10f   :  { %v701_v24 = vmax.f32 %v684_v18, 0.0  ;;  %2183 = vmatmul.mubr.msk.f32.vlgmr.msra.gmra.mrb[12].mxu1 %vm3138_vm2, %v40_v55  ;;  %1196 = vmatprep.mubr.f32.mxu0 %v3118_v0 }
 0x110   :  { %1267 = vmatprep.mubr.f32.mxu1 %v3118_v0  ;;  %1132 = vmatprep.subr.mxu0 %v699_v22 }
 0x111   :  { %1203 = vmatprep.subr.mxu1 %v701_v24  ;;  %1133 = vmatpush1.msra.mxu0 %v698_v25  ;;  %v2528_v38 = vpop.permute.xlu1 %1628  ;;  %v2381_v24 = vmov 10   ;;  %v2382_v25 = vmov 13  }
 0x112   :  { %1204 = vmatpush1.msra.mxu1 %v700_v26  ;;  %2184 = vmatmul.mubr.msk.f32.vlgmr.msra.gmra.mrb[14].mxu0 %vm3138_vm2, %v40_v55  ;;  %v2383_v26 = vmov 9  }
 0x113   :  { %2185 = vmatmul.mubr.msk.f32.vlgmr.msra.gmra.mrb[14].mxu1 %vm3138_vm2, %v40_v55  ;;  %1852 = vmatprep.mubr.f32.mxu0 %v3118_v0 }
 0x114   :  { %1929 = vmatprep.mubr.f32.mxu1 %v3118_v0 }
 0x115   :  { %v2532_v40 = vpop.permute.xlu1 %1636 }
 0x119   :  { %v1653_v46 = vpop.permute.xlu1 %1652 }
 0x1d9   :  { %v2534_v42 = vpop.f32.mrb[8].mxu0 }
 0x1da   :  { %3163 = vst [vmem:[#allocation13_spill] sm:$0xff] %v2534_v42  ;;  %v2536_v43 = vpop.f32.mrb[8].mxu1  ;;  %v2538_v44 = vpop.f32.mrb[9].mxu0  ;;  %v1439_v47 = vmul.f32 %v1437_v31, %v2534_v42  ;;  %v1647_v48 = vmul.f32 %v1645_v41, %v2534_v42 }
 0x1db   :  { %3164 = vst [vmem:[#allocation14_spill] sm:$0xff] %v2536_v43  ;;  %3165 = vst [vmem:[#allocation15_spill] sm:$0xff] %v2538_v44  ;;  %v2540_v45 = vpop.f32.mrb[9].mxu1  ;;  %v1441_v49 = vmul.f32 %v1437_v31, %v2536_v43  ;;  %v1649_v50 = vmul.f32 %v1645_v41, %v2536_v43  ;;  %v1440_v51 = vmul.f32 %v1437_v31, %v2538_v44 }
 0x1dc   :  { %3166 = vst [vmem:[#allocation16_spill] sm:$0xff] %v2540_v45  ;;  %v1648_v52 = vmul.f32 %v1645_v41, %v2538_v44  ;;  %v1442_v53 = vmul.f32 %v1437_v31, %v2540_v45  ;;  %v1650_v54 = vmul.f32 %v1645_v41, %v2540_v45  ;;  %v2386_v31 = vmov 12  }
 0x1dd   :  { %v2550_v55 = vpop.f32.mrb[10].mxu0  ;;  %v2388_v41 = vmov 15  }
 0x1de   :  { %3167 = vst [vmem:[#allocation17_spill] sm:$0xff] %v2550_v55  ;;  %v2552_v56 = vpop.f32.mrb[10].mxu1  ;;  %v1447_v57 = vmul.f32 %v1445_v32, %v2550_v55  ;;  %v1655_v58 = vmul.f32 %v1653_v46, %v2550_v55  ;;  %1369 = vrot.lane.b32.xlu0 %v2550_v55, %s2379_s1  ;;  %v2562_v62 = vpop.f32.mrb[11].mxu0 }
 0x1df   :  { %3168 = vst [vmem:[#allocation18_spill] sm:$0xff] %v2552_v56  ;;  %v1449_v59 = vmul.f32 %v1445_v32, %v2552_v56  ;;  %v1657_v60 = vmul.f32 %v1653_v46, %v2552_v56  ;;  %v2558_v61 = vpop.f32.mrb[11].mxu1  ;;  %3170 = vst [vmem:[#allocation20_spill] sm:$0xff] %v2562_v62  ;;  %v1448_v2 = vmul.f32 %v1445_v32, %v2562_v62  ;;  %1371 = vrot.lane.b32.xlu1 %v2562_v62, %s2379_s1 }
 0x1e0   :  { %3169 = vst [vmem:[#allocation19_spill] sm:$0xff] %v2558_v61  ;;  %v1450_v63 = vmul.f32 %v1445_v32, %v2558_v61  ;;  %v1658_v1 = vmul.f32 %v1653_v46, %v2558_v61  ;;  %v1656_v3 = vmul.f32 %v1653_v46, %v2562_v62  ;;  %v2570_v4 = vadd.f32 %v1447_v57, %v1439_v47  ;;  %v2649_v47 = vpop.permute.xlu1 %1660 }
 0x1e1   :  { %v2572_v5 = vadd.f32 %v1655_v58, %v1647_v48  ;;  %v2574_v6 = vadd.f32 %v1449_v59, %v1441_v49  ;;  %v2576_v7 = vadd.f32 %v1657_v60, %v1649_v50  ;;  %v2582_v10 = vadd.f32 %v1448_v2, %v1440_v51  ;;  %v2586_v12 = vpop.f32.mrb[12].mxu0  ;;  %v1669_v49 = vpop.permute.xlu0 %1668 }
 0x1e2   :  { %v2578_v8 = vadd.f32 %v1450_v63, %v1442_v53  ;;  %v2580_v9 = vadd.f32 %v1658_v1, %v1650_v54  ;;  %v2584_v11 = vadd.f32 %v1656_v3, %v1648_v52  ;;  %3172 = vst [vmem:[#allocation22_spill] sm:$0xff] %v2586_v12  ;;  %v2588_v13 = vpop.f32.mrb[12].mxu1  ;;  %1373 = vrot.lane.b32.xlu0 %v2552_v56, %s2379_s1  ;;  %v2592_v14 = vpop.f32.mrb[13].mxu0  ;;  %v2387_v32 = vmov 14  }
 0x1e3   :  { %3173 = vst [vmem:[#allocation23_spill] sm:$0xff] %v2588_v13  ;;  %3174 = vst [vmem:[#allocation24_spill] sm:$0xff] %v2592_v14  ;;  %v2594_v15 = vpop.f32.mrb[13].mxu1  ;;  %1375 = vrot.lane.b32.xlu1 %v2558_v61, %s2379_s1  ;;  %v2389_v46 = vmov 17   ;;  %v1274_v48 = vlaneseq  ;;  %v2717_v61 = vmul.f32 %v2520_v34, %v2588_v13 }
 0x1e4   :  { %3171 = vst [vmem:[#allocation21_spill] sm:$0xff] %v2580_v9  ;;  %3175 = vst [vmem:[#allocation25_spill] sm:$0xff] %v2594_v15 }
 0x1e5   :  { %v2598_v16 = vpop.f32.mrb[14].mxu0  ;;  %v2651_v50 = vand.u32 127, %v1274_v48 }
 0x1e6   :  { %3176 = vst [vmem:[#allocation26_spill] sm:$0xff] %v2598_v16  ;;  %v2600_v17 = vpop.f32.mrb[14].mxu1  ;;  %1336 = vrot.lane.b32.xlu0 %v2586_v12, %s2359_s3  ;;  %v2606_v22 = vpop.f32.mrb[15].mxu0 }
 0x1e7   :  { %3177 = vst [vmem:[#allocation27_spill] sm:$0xff] %v2600_v17  ;;  %v2604_v18 = vpop.f32.mrb[15].mxu1  ;;  %3179 = vst [vmem:[#allocation29_spill] sm:$0xff] %v2606_v22  ;;  %1338 = vrot.lane.b32.xlu1 %v2592_v14, %s2359_s3  ;;  %v1276_v53 = vadd.s32 128, %v2651_v50  ;;  %v1277_v54 = vadd.s32 256, %v2651_v50  ;;  %vm1377_vm3 = vcmp.lt.s32.totalorder %v2651_v50, 1 }
 0x1e8   :  { %3178 = vst [vmem:[#allocation28_spill] sm:$0xff] %v2604_v18  ;;  %vm1344_vm8 = vcmp.lt.s32.totalorder %v2651_v50, 8  ;;  %vm1327_vm11 = vcmp.lt.s32.totalorder %v2651_v50, 9 }
 0x1e9   :  { %v2656_v58 = vand.u32 255, %v1276_v53  ;;  %v2658_v59 = vand.u32 255, %v1277_v54 }
 0x1ea   :  { %1340 = vrot.lane.b32.xlu0 %v2588_v13, %s2359_s3 }
 0x1eb   :  { %1342 = vrot.lane.b32.xlu1 %v2594_v15, %s2359_s3  ;;  %3180 = vst [vmem:[#allocation30_spill] sm:$0xff] %v2656_v58  ;;  %3181 = vst [vmem:[#allocation31_spill] sm:$0xff] %v2658_v59  ;;  %v1288_v1 = vshra.s32 %v2656_v58, 3  ;;  %v1296_v3 = vand.u32 7, %v2656_v58 }
 0x1ed   :  { %vm2676_vm4 = vcmp.ge.s32.totalorder %v1296_v3, 1  ;;  %v2695_v3 = vmul.f32 %v2520_v34, %v2586_v12 }
 0x1ee   :  { %1323 = vrot.lane.b32.xlu0 %v2600_v17, %s2380_s6 }
 0x1ef   :  { %1319 = vrot.lane.b32.xlu1 %v2598_v16, %s2380_s6 }
 0x1f2   :  { %1353 = vrot.lane.b32.xlu0 %v2598_v16, %s2359_s3 }
 0x1f3   :  { %1321 = vrot.lane.b32.xlu1 %v2606_v22, %s2380_s6 }
 0x1f6   :  { %1357 = vrot.lane.b32.xlu0 %v2600_v17, %s2359_s3 }
 0x1f7   :  { %1325 = vrot.lane.b32.xlu1 %v2604_v18, %s2380_s6 }
 0x1fa   :  { %1386 = vrot.lane.b32.xlu0 %v2598_v16, %s2379_s1 }
 0x1fb   :  { %1355 = vrot.lane.b32.xlu1 %v2606_v22, %s2359_s3 }
 0x1fe   :  { %1390 = vrot.lane.b32.xlu0 %v2600_v17, %s2379_s1 }
 0x1ff   :  { %1359 = vrot.lane.b32.xlu1 %v2604_v18, %s2359_s3 }
 0x202   :  { %1468 = vperm.xlu0 %2260, %v2477_v20  }
 0x203   :  { %1388 = vrot.lane.b32.xlu1 %v2606_v22, %s2379_s1 }
 0x206   :  { %2263 = vset.pattern.permute.xlu0 %v2381_v24  ;;  %v1297_v24 = vand.u32 7, %v2658_v59 }
 0x207   :  { %1516 = vperm.xlu0 %2263, %v2477_v20   ;;  %1392 = vrot.lane.b32.xlu1 %v2604_v18, %s2379_s1 }
 0x208   :  { %vm2680_vm5 = vcmp.ge.s32.totalorder %v1297_v24, 1 }
 0x20b   :  { %2266 = vset.pattern.permute.xlu0 %v2382_v25  ;;  %1676 = vperm.xlu1 %2261, %v2477_v20  }
 0x20c   :  { %1540 = vperm.xlu0 %2266, %v2477_v20  }
 0x20f   :  { %2262 = vset.pattern.permute.xlu1 %v2383_v26 }
 0x210   :  { %2269 = vset.pattern.permute.xlu0 %v2384_v27  ;;  %1508 = vperm.xlu1 %2262, %v2477_v20  }
 0x211   :  { %1564 = vperm.xlu0 %2269, %v2477_v20  }
 0x214   :  { %2264 = vset.pattern.permute.xlu1 %v2385_v28  ;;  %v2670_v28 = vand.u32 7, %v1288_v1 }
 0x215   :  { %1524 = vperm.xlu1 %2264, %v2477_v20   ;;  %2272 = vset.pattern.permute.xlu0 %v2364_v23 }
 0x216   :  { %vm1300_vm9 = vcmp.ge.s32.totalorder %v2670_v28, 1 }
 0x217   :  { %vm1308_vm14 = vmand %vm1300_vm9, %vm2676_vm4 }
 0x219   :  { %2265 = vset.pattern.permute.xlu1 %v2386_v31  ;;  %v1289_v31 = vshra.s32 %v2658_v59, 3 }
 0x21a   :  { %1532 = vperm.xlu1 %2265, %v2477_v20  }
 0x21e   :  { %2267 = vset.pattern.permute.xlu1 %v2387_v32 }
 0x21f   :  { %1548 = vperm.xlu1 %2267, %v2477_v20  }
 0x223   :  { %2268 = vset.pattern.permute.xlu1 %v2388_v41 }
 0x224   :  { %1556 = vperm.xlu1 %2268, %v2477_v20  }
 0x228   :  { %2270 = vset.pattern.permute.xlu1 %v2389_v46 }
 0x229   :  { %1572 = vperm.xlu1 %2270, %v2477_v20   ;;  %v1278_v20 = vadd.s32 384, %v2651_v50 }
 0x22b   :  { %v2663_v60 = vand.u32 255, %v1278_v20 }
 0x22d   :  { %2271 = vset.pattern.permute.xlu1 %v2362_v21  ;;  %3183 = vst [vmem:[#allocation33_spill] sm:$0xff] %v2663_v60  ;;  %v1298_v26 = vand.u32 7, %v2663_v60  ;;  %v1290_v46 = vshra.s32 %v2663_v60, 3 }
 0x22e   :  { %1757 = vperm.xlu1 %2271, %v2469_v19  }
 0x22f   :  { %vm2688_vm7 = vcmp.ge.s32.totalorder %v1298_v26, 1  ;;  %v2703_v26 = vmul.f32 %v1669_v49, %v2586_v12  ;;  %v2709_v58 = vand.u32 7, %v1290_v46 }
 0x231   :  { %vm1302_vm13 = vcmp.ge.s32.totalorder %v2709_v58, 1 }
 0x232   :  { %2273 = vset.pattern.permute.xlu1 %v2364_v23  ;;  %v2661_v23 = vand.u32 255, %v2651_v50  ;;  %vm1310_vm1 = vmand %vm1302_vm13, %vm2688_vm7 }
 0x234   :  { %3182 = vst [vmem:[#allocation32_spill] sm:$0xff] %v2661_v23  ;;  %v1295_v25 = vand.u32 7, %v2661_v23  ;;  %v1287_v41 = vshra.s32 %v2661_v23, 3  ;;  %v2713_v23 = vmul.f32 %v2520_v34, %v2592_v14 }
 0x236   :  { %vm2684_vm6 = vcmp.ge.s32.totalorder %v1295_v25, 1  ;;  %v2700_v25 = vand.u32 7, %v1289_v31  ;;  %v2707_v59 = vand.u32 7, %v1287_v41  ;;  %v2720_v31 = vmul.f32 %v1669_v49, %v2588_v13 }
 0x237   :  { %v2729_v41 = vmul.f32 %v2520_v34, %v2594_v15  ;;  %v2740_v13 = vmul.f32 %v1669_v49, %v2594_v15 }
 0x238   :  { %vm1301_vm10 = vcmp.ge.s32.totalorder %v2700_v25, 1  ;;  %vm1299_vm12 = vcmp.ge.s32.totalorder %v2707_v59, 1 }
 0x239   :  { %vm2796_vm15 = vmand %vm1301_vm10, %vm2680_vm5 }
 0x23a   :  { %vm1307_vm2 = vmand %vm1299_vm12, %vm2684_vm6 }
 0x250   :  { %v1370_v51 = vpop.permute.xlu0 %1369 }
 0x251   :  { %v1372_v52 = vpop.permute.xlu1 %1371 }
 0x252   :  { %v1380_v24 = vsel %vm1377_vm3, %v1370_v51, %v1372_v52 }
 0x253   :  { %v2733_v46 = vsel %vm2676_vm4, %v1380_v24, 0.0 }
 0x254   :  { %v1374_v57 = vpop.permute.xlu0 %1373  ;;  %3192 = vst [vmem:[#allocation34_spill] sm:$0xff] %v2733_v46  ;;  %v2768_v15 = vmul.f32 %v2532_v40, %v2733_v46 }
 0x255   :  { %v1376_v21 = vpop.permute.xlu1 %1375  ;;  %v1379_v60 = vsel %vm1377_vm3, %v1372_v52, %v1374_v57  ;;  %v2725_v52 = vmul.f32 %v1669_v49, %v2592_v14  ;;  %v1432_v49 = vmul.f32 %v2522_v35, %v2733_v46 }
 0x256   :  { %v1381_v12 = vsel %vm1377_vm3, %v1376_v21, %v1370_v51  ;;  %v1378_v56 = vsel %vm1377_vm3, %v1374_v57, %v1376_v21  ;;  %v2744_v51 = vsel %vm2680_vm5, %v1379_v60, 0.0  ;;  %3196 = vst [vmem:[#allocation38_spill] sm:$0xff] %v2768_v15 }
 0x257   :  { %3193 = vst [vmem:[#allocation35_spill] sm:$0xff] %v2744_v51  ;;  %v2750_v24 = vsel %vm2684_vm6, %v1381_v12, 0.0  ;;  %v2760_v21 = vsel %vm2688_vm7, %v1378_v56, 0.0  ;;  %v1433_v14 = vmul.f32 %v2522_v35, %v2744_v51  ;;  %v2774_v55 = vmul.f32 %v2532_v40, %v2744_v51 }
 0x258   :  { %v1337_v63 = vpop.permute.xlu0 %1336  ;;  %3194 = vst [vmem:[#allocation36_spill] sm:$0xff] %v2750_v24  ;;  %3195 = vst [vmem:[#allocation37_spill] sm:$0xff] %v2760_v21 }
 0x259   :  { %v1339_v2 = vpop.permute.xlu1 %1338 }
 0x25a   :  { %v1347_v57 = vsel %vm1344_vm8, %v1337_v63, %v1339_v2 }
 0x25c   :  { %v1341_v27 = vpop.permute.xlu0 %1340 }
 0x25d   :  { %v1343_v32 = vpop.permute.xlu1 %1342  ;;  %v1346_v60 = vsel %vm1344_vm8, %v1339_v2, %v1341_v27  ;;  %v2788_v2 = vsel %vm1300_vm9, %v1347_v57, 0.0  ;;  %v2804_v57 = vmul.f32 %v2522_v35, %v2760_v21 }
 0x25e   :  { %v1348_v12 = vsel %vm1344_vm8, %v1343_v32, %v1337_v63  ;;  %v2784_v63 = vmul.f32 %v2522_v35, %v2750_v24  ;;  %3197 = vst [vmem:[#allocation39_spill] sm:$0xff] %v2788_v2  ;;  %v1345_v45 = vsel %vm1344_vm8, %v1341_v27, %v1343_v32  ;;  %v2808_v27 = vmul.f32 %v2532_v40, %v2750_v24 }
 0x25f   :  { %v2812_v32 = vsel %vm1301_vm10, %v1346_v60, 0.0  ;;  %v2816_v46 = vsel %vm1299_vm12, %v1348_v12, 0.0  ;;  %v2824_v35 = vmul.f32 %v2532_v40, %v2760_v21  ;;  %v1416_v24 = vmul.f32 %v2514_v29, %v2788_v2 }
 0x260   :  { %v1324_v1 = vpop.permute.xlu0 %1323  ;;  %3200 = vst [vmem:[#allocation40_spill] sm:$0xff] %v2808_v27  ;;  %3201 = vst [vmem:[#allocation41_spill] sm:$0xff] %v2812_v32  ;;  %v2840_v40 = vmul.f32 %v2530_v39, %v2788_v2 }
 0x261   :  { %v1320_v0 = vpop.permute.xlu1 %1319  ;;  %3202 = vst [vmem:[#allocation42_spill] sm:$0xff] %v2816_v46 }
 0x262   :  { %3204 = vst [vmem:[#allocation44_spill] sm:$0xff] %v2840_v40 }
 0x264   :  { %v2737_v62 = vpop.permute.xlu0 %1353 }
 0x265   :  { %v1322_v34 = vpop.permute.xlu1 %1321 }
 0x266   :  { %v1330_v56 = vsel %vm1327_vm11, %v1320_v0, %v1322_v34  ;;  %v1329_v44 = vsel %vm1327_vm11, %v1322_v34, %v1324_v1 }
 0x267   :  { %v2826_v34 = vsel %vm1308_vm14, %v1330_v56, 0.0  ;;  %v2844_v56 = vsel %vm1302_vm13, %v1345_v45, 0.0  ;;  %v2848_v21 = vsel %vm2796_vm15, %v1329_v44, 0.0 }
 0x268   :  { %v1358_v42 = vpop.permute.xlu0 %1357  ;;  %3203 = vst [vmem:[#allocation43_spill] sm:$0xff] %v2826_v34  ;;  %3205 = vst [vmem:[#allocation45_spill] sm:$0xff] %v2844_v56  ;;  %v1408_v45 = vmul.f32 %v2518_v33, %v2826_v34  ;;  %v1409_v27 = vmul.f32 %v2518_v33, %v2848_v21 }
 0x269   :  { %v1326_v51 = vpop.permute.xlu1 %1325  ;;  %3206 = vst [vmem:[#allocation46_spill] sm:$0xff] %v2848_v21 }
 0x26a   :  { %v1328_v60 = vsel %vm1327_vm11, %v1324_v1, %v1326_v51  ;;  %v1331_v12 = vsel %vm1327_vm11, %v1326_v51, %v1320_v0  ;;  %v1417_v1 = vmul.f32 %v2514_v29, %v2812_v32  ;;  %v1625_v0 = vmul.f32 %v2530_v39, %v2812_v32 }
 0x26b   :  { %v1415_v51 = vmul.f32 %v2514_v29, %v2816_v46  ;;  %v2856_v19 = vsel %vm1307_vm2, %v1331_v12, 0.0  ;;  %v2860_v40 = vsel %vm1310_vm1, %v1328_v60, 0.0  ;;  %v1418_v32 = vmul.f32 %v2514_v29, %v2844_v56 }
 0x26c   :  { %3207 = vst [vmem:[#allocation47_spill] sm:$0xff] %v2860_v40  ;;  %v1626_v12 = vmul.f32 %v2530_v39, %v2844_v56  ;;  %v1617_v60 = vmul.f32 %v2524_v36, %v2848_v21  ;;  %v1387_v15 = vpop.permute.xlu0 %1386  ;;  %v2877_v46 = vmul.f32 %v2524_v36, %v2826_v34  ;;  %v1410_v39 = vmul.f32 %v2518_v33, %v2860_v40 }
 0x26d   :  { %v1356_v2 = vpop.permute.xlu1 %1355  ;;  %v1618_v21 = vmul.f32 %v2524_v36, %v2860_v40  ;;  %v1476_v28 = vadd.f32 %v1416_v24, %v1408_v45  ;;  %v2906_v9 = vmul.f32 %v2524_v36, %v2856_v19 }
 0x26e   :  { %v1362_v43 = vsel %vm1344_vm8, %v1356_v2, %v1358_v42  ;;  %v1363_v44 = vsel %vm1344_vm8, %v2737_v62, %v1356_v2  ;;  %3208 = vst [vmem:[#allocation48_spill] sm:$0xff] %v2877_v46  ;;  %v1407_v2 = vmul.f32 %v2518_v33, %v2856_v19  ;;  %v1685_v40 = vadd.f32 %v1625_v0, %v1617_v60 }
 0x26f   :  { %v2883_v29 = vsel %vm1300_vm9, %v1363_v44, 0.0  ;;  %v2887_v56 = vsel %vm1301_vm10, %v1362_v43, 0.0  ;;  %v1477_v43 = vadd.f32 %v1417_v1, %v1409_v27  ;;  %v1478_v45 = vadd.f32 %v1418_v32, %v1410_v39 }
 0x270   :  { %3209 = vst [vmem:[#allocation49_spill] sm:$0xff] %v2887_v56  ;;  %v1424_v34 = vmul.f32 %v2516_v30, %v2883_v29  ;;  %v1425_v46 = vmul.f32 %v2516_v30, %v2887_v56  ;;  %v1633_v44 = vmul.f32 %v2528_v38, %v2887_v56  ;;  %v1475_v16 = vadd.f32 %v1415_v51, %v1407_v2 }
 0x271   :  { %v1360_v18 = vpop.permute.xlu1 %1359  ;;  %v1686_v56 = vadd.f32 %v1626_v12, %v1618_v21 }
 0x272   :  { %v1361_v25 = vsel %vm1344_vm8, %v1358_v42, %v1360_v18  ;;  %v1364_v33 = vsel %vm1344_vm8, %v1360_v18, %v2737_v62  ;;  %v1480_v17 = vadd.f32 %v1432_v49, %v1424_v34  ;;  %v1481_v22 = vadd.f32 %v1433_v14, %v1425_v46  ;;  %v1391_v62 = vpop.permute.xlu0 %1390 }
 0x273   :  { %v2910_v24 = vsel %vm1299_vm12, %v1364_v33, 0.0  ;;  %v2914_v42 = vsel %vm1302_vm13, %v1361_v25, 0.0  ;;  %v1689_v36 = vadd.f32 %v2774_v55, %v1633_v44  ;;  %v1632_v49 = vmul.f32 %v2528_v38, %v2883_v29 }
 0x274   :  { %v1423_v18 = vmul.f32 %v2516_v30, %v2910_v24  ;;  %v1426_v14 = vmul.f32 %v2516_v30, %v2914_v42  ;;  %v1634_v59 = vmul.f32 %v2528_v38, %v2914_v42  ;;  %v1631_v21 = vmul.f32 %v2528_v38, %v2910_v24 }
 0x275   :  { %v1389_v46 = vpop.permute.xlu1 %1388  ;;  %v1492_v27 = vadd.f32 %v1480_v17, %v1476_v28  ;;  %v1493_v30 = vadd.f32 %v1481_v22, %v1477_v43  ;;  %v1701_v51 = vadd.f32 %v1689_v36, %v1685_v40  ;;  %vm3260_vm13 = vcmask 64512  }
 0x276   :  { %v1395_v58 = vsel %vm1377_vm3, %v1389_v46, %v1391_v62  ;;  %v1396_v39 = vsel %vm1377_vm3, %v1387_v15, %v1389_v46  ;;  %v1479_v32 = vadd.f32 %v2784_v63, %v1423_v18  ;;  %v1482_v55 = vadd.f32 %v2804_v57, %v1426_v14  ;;  %vm3261_vm14 = vmmov %vm3260_vm13 }
 0x277   :  { %v2935_v34 = vsel %vm2676_vm4, %v1396_v39, 0.0  ;;  %v2939_v1 = vsel %vm2680_vm5, %v1395_v58, 0.0  ;;  %v1690_v48 = vadd.f32 %v2824_v35, %v1634_v59  ;;  %vm1723_vm4 = vcmp.lt.s32.totalorder %v2651_v50, 64  ;;  %v42_v50 = vld [vmem:[#allocation5 + $0x20] sm:$0xff]  ;;  %vm3262_vm15 = vmmov %vm3260_vm13 }
 0x278   :  { %v1456_v0 = vmul.f32 %v2526_v37, %v2935_v34  ;;  %v1457_v38 = vmul.f32 %v2526_v37, %v2939_v1  ;;  %v1664_v17 = vmul.f32 %v2649_v47, %v2935_v34  ;;  %v1665_v22 = vmul.f32 %v2649_v47, %v2939_v1 }
 0x279   :  { %v1393_v63 = vpop.permute.xlu1 %1392  ;;  %v1491_v25 = vadd.f32 %v1479_v32, %v1475_v16  ;;  %v1494_v33 = vadd.f32 %v1482_v55, %v1478_v45  ;;  %v3216_v32 = vld [vmem:[#allocation12_spill] sm:$0xff] }
 0x27a   :  { %v1394_v53 = vsel %vm1377_vm3, %v1391_v62, %v1393_v63  ;;  %v1397_v57 = vsel %vm1377_vm3, %v1393_v63, %v1387_v15  ;;  %v1488_v12 = vadd.f32 %v2713_v23, %v1456_v0  ;;  %v1489_v60 = vadd.f32 %v2717_v61, %v1457_v38  ;;  %v3217_v38 = vld [vmem:[#allocation38_spill] sm:$0xff] }
 0x27b   :  { %v1696_v2 = vadd.f32 %v2725_v52, %v1664_v17  ;;  %v1697_v28 = vadd.f32 %v2720_v31, %v1665_v22  ;;  %v2960_v44 = vsel %vm2684_vm6, %v1397_v57, 0.0  ;;  %v2964_v35 = vsel %vm2688_vm7, %v1394_v53, 0.0  ;;  %v3218_v17 = vld [vmem:[#allocation40_spill] sm:$0xff] }
 0x27c   :  { %v1455_v15 = vmul.f32 %v2526_v37, %v2960_v44  ;;  %v1458_v61 = vmul.f32 %v2526_v37, %v2964_v35  ;;  %v1663_v23 = vmul.f32 %v2649_v47, %v2960_v44  ;;  %v1666_v54 = vmul.f32 %v2649_v47, %v2964_v35  ;;  %v3219_v57 = vld [vmem:[#allocation48_spill] sm:$0xff] }
 0x27d   :  { %v1496_v31 = vadd.f32 %v1488_v12, %v2582_v10  ;;  %v1497_v20 = vadd.f32 %v1489_v60, %v2574_v6  ;;  %v1704_v52 = vadd.f32 %v1696_v2, %v2584_v11  ;;  %v1705_v16 = vadd.f32 %v1697_v28, %v2576_v7  ;;  %v3210_v7 = vld [vmem:[#allocation21_spill] sm:$0xff] }
 0x27e   :  { %v1487_v40 = vadd.f32 %v2695_v3, %v1455_v15  ;;  %v1490_v43 = vadd.f32 %v2729_v41, %v1458_v61  ;;  %v1695_v37 = vadd.f32 %v2703_v26, %v1663_v23  ;;  %v1698_v45 = vadd.f32 %v2740_v13, %v1666_v54  ;;  %v3211_v3 = vld [vmem:[#allocation26_spill] sm:$0xff]  ;;  %v3212_v41 = vld [vmem:[#allocation29_spill] sm:$0xff]  ;;  %v3213_v26 = vld [vmem:[#allocation27_spill] sm:$0xff] }
 0x27f   :  { %v1500_v62 = vadd.f32 %v1496_v31, %v1492_v27  ;;  %v1501_v18 = vadd.f32 %v1497_v20, %v1493_v30  ;;  %v1709_v14 = vadd.f32 %v1705_v16, %v1701_v51  ;;  %v1702_v47 = vadd.f32 %v1690_v48, %v1686_v56  ;;  %v3214_v13 = vld [vmem:[#allocation28_spill] sm:$0xff]  ;;  %v3215_v30 = vld [vmem:[#allocation42_spill] sm:$0xff] }
 0x280   :  { %v1495_v10 = vadd.f32 %v1487_v40, %v2570_v4  ;;  %v1498_v6 = vadd.f32 %v1490_v43, %v2578_v8  ;;  %v1703_v11 = vadd.f32 %v1695_v37, %v2572_v5  ;;  %v1706_v36 = vadd.f32 %v1698_v45, %v3210_v7  ;;  %v3220_v51 = vld [vmem:[#allocation44_spill] sm:$0xff] }
 0x281   :  { %v1469_v46 = vpop.permute.xlu0 %1468  ;;  %v1623_v56 = vmul.f32 %v3216_v32, %v3215_v30  ;;  %v1688_v8 = vadd.f32 %v3217_v38, %v1632_v49  ;;  %v1687_v5 = vadd.f32 %v3218_v17, %v1631_v21  ;;  %v1684_v12 = vadd.f32 %v3220_v51, %v3219_v57  ;;  %v1769_v49 = vld [vmem:[#allocation2 + $0x8] sm:$0xff]  ;;  %v46_v32 = vld [vmem:[#allocation5 + $0x38] sm:$0xff]  ;;  %v3232_v17 = vld [vmem:[#allocation11_spill] sm:$0xff] }
 0x282   :  { %v1471_v59 = vmul.f32 %v1469_v46, %v3211_v3  ;;  %v1472_v58 = vmul.f32 %v1469_v46, %v3212_v41  ;;  %v1473_v39 = vmul.f32 %v1469_v46, %v3213_v26  ;;  %v1474_v27 = vmul.f32 %v1469_v46, %v3214_v13  ;;  %v3222_v46 = vld [vmem:[#allocation41_spill] sm:$0xff] }
 0x283   :  { %v1499_v55 = vadd.f32 %v1495_v10, %v1491_v25  ;;  %v1502_v0 = vadd.f32 %v1498_v6, %v1494_v33  ;;  %v1710_v4 = vadd.f32 %v1706_v36, %v1702_v47  ;;  %v1683_v60 = vadd.f32 %v1623_v56, %v2906_v9  ;;  %v1768_v25 = vld [vmem:[#allocation2] sm:$0xff]  ;;  %v3223_v6 = vld [vmem:[#allocation45_spill] sm:$0xff] }
 0x284   :  { %v1504_v22 = vadd.f32 %v1500_v62, %v1472_v58  ;;  %v1505_v63 = vadd.f32 %v1501_v18, %v1473_v39  ;;  %v1700_v28 = vadd.f32 %v1688_v8, %v1684_v12  ;;  %v1772_v61 = vcombine.high %v1768_v25, %v1768_v25  ;;  %v3221_v18 = vld [vmem:[#allocation39_spill] sm:$0xff]  ;;  %v3225_v58 = vld [vmem:[#allocation46_spill] sm:$0xff]  ;;  %v3234_v12 = vld [vmem:[#allocation36_spill] sm:$0xff] }
 0x285   :  { %v1503_v48 = vadd.f32 %v1499_v55, %v1471_v59  ;;  %v1506_v53 = vadd.f32 %v1502_v0, %v1474_v27  ;;  %v1699_v2 = vadd.f32 %v1687_v5, %v1683_v60  ;;  %v1773_v23 = vcombine.high %v1769_v49, %v1769_v49  ;;  %v3224_v36 = vld [vmem:[#allocation43_spill] sm:$0xff]  ;;  %v51_v8 = vld [vmem:[#allocation5 + $0x58] sm:$0xff] }
 0x286   :  { %1717 = vrot.lane.b32.xlu1 %v1504_v22, %s2390_s7  ;;  %v1708_v15 = vadd.f32 %v1704_v52, %v1700_v28  ;;  %v1517_v54 = vpop.permute.xlu0 %1516  ;;  %2186 = vmatprep.subr.msk.mxu0 %vm85_vm0, %v1772_v61  ;;  %v45_v52 = vld [vmem:[#allocation5 + $0x30] sm:$0xff]  ;;  %v3226_v27 = vld [vmem:[#allocation47_spill] sm:$0xff]  ;;  %v3229_v38 = vmov 0.0  }
 0x287   :  { %1715 = vrot.lane.b32.xlu0 %v1503_v48, %s2390_s7  ;;  %v1707_v21 = vadd.f32 %v1703_v11, %v1699_v2  ;;  %2190 = vmatprep.subr.msk.mxu1 %vm85_vm0, %v1773_v23  ;;  %v1519_v62 = vmul.f32 %v1517_v54, %v3215_v30  ;;  %v1520_v47 = vmul.f32 %v1517_v54, %v3221_v18  ;;  %v3235_v2 = vld [vmem:[#allocation34_spill] sm:$0xff]  ;;  %v3242_v18 = vld [vmem:[#allocation17_spill] sm:$0xff] }
 0x288   :  { %2187 = vmatpush1.msk.msra.mxu0 %vm85_vm0, %v1768_v25  ;;  %2191 = vmatpush1.msk.msra.mxu1 %vm85_vm0, %v1769_v49  ;;  %v1521_v10 = vmul.f32 %v1517_v54, %v3222_v46  ;;  %v1522_v11 = vmul.f32 %v1517_v54, %v3223_v6  ;;  %vm3227_vm0 = vcmask 31744   ;;  %v3236_v25 = vld [vmem:[#allocation35_spill] sm:$0xff]  ;;  %v3238_v54 = vld [vmem:[#allocation13_spill] sm:$0xff]  ;;  %v3243_v46 = vld [vmem:[#allocation20_spill] sm:$0xff] }
 0x289   :  { %2188 = vmatmul.mubr.msk.f32.vlgmr.msra.gmra.mrb[16].mxu0 %vm3227_vm0, %v45_v52  ;;  %vm3228_vm1 = vmmov %vm3227_vm0  ;;  %v3244_v6 = vld [vmem:[#allocation18_spill] sm:$0xff] }
 0x28a   :  { %v1677_v33 = vpop.permute.xlu1 %1676  ;;  %1721 = vrot.lane.b32.xlu1 %v1506_v53, %s2390_s7  ;;  %2192 = vmatmul.mubr.msk.f32.vlgmr.msra.gmra.mrb[16].mxu1 %vm3228_vm1, %v45_v52  ;;  %vm3230_vm2 = vmmov %vm3227_vm0 }
 0x28b   :  { %1719 = vrot.lane.b32.xlu0 %v1505_v63, %s2390_s7  ;;  %v1679_v9 = vmul.f32 %v1677_v33, %v3211_v3  ;;  %v1680_v31 = vmul.f32 %v1677_v33, %v3212_v41  ;;  %v1681_v20 = vmul.f32 %v1677_v33, %v3213_v26  ;;  %v1682_v16 = vmul.f32 %v1677_v33, %v3214_v13  ;;  %vm3231_vm3 = vmmov %vm3227_vm0  ;;  %v3233_v63 = vld [vmem:[#allocation49_spill] sm:$0xff]  ;;  %v1541_v51 = vpop.permute.xlu0 %1540 }
 0x28c   :  { %1858 = vmatprep.mubr.f32.mxu0 %v3229_v38  ;;  %1935 = vmatprep.mubr.f32.mxu1 %v3229_v38  ;;  %v3237_v33 = vld [vmem:[#allocation37_spill] sm:$0xff]  ;;  %vm3263_vm0 = vmmov %vm3260_vm13 }
 0x28d   :  { %v1711_v40 = vadd.f32 %v1707_v21, %v1679_v9  ;;  %v1712_v43 = vadd.f32 %v1708_v15, %v1680_v31  ;;  %v1713_v37 = vadd.f32 %v1709_v14, %v1681_v20  ;;  %v1714_v45 = vadd.f32 %v1710_v4, %v1682_v16  ;;  %2189 = vmatmul.mubr.msk.f32.gmra.mrb[18].mxu0 %vm3230_vm2, %v46_v32  ;;  %v3239_v9 = vld [vmem:[#allocation15_spill] sm:$0xff]  ;;  %v3240_v20 = vld [vmem:[#allocation14_spill] sm:$0xff]  ;;  %v3241_v16 = vld [vmem:[#allocation16_spill] sm:$0xff] }
 0x28e   :  { %2193 = vmatmul.mubr.msk.f32.gmra.mrb[18].mxu1 %vm3231_vm3, %v46_v32  ;;  %2012 = vmatprep.mubr.f32.mxu0 %v3229_v38  ;;  %v1544_v31 = vmul.f32 %v1541_v51, %v3239_v9 }
 0x28f   :  { %1732 = vrot.lane.b32.xlu0 %v1711_v40, %s2390_s7  ;;  %v1509_v7 = vpop.permute.xlu1 %1508  ;;  %1734 = vrot.lane.b32.xlu1 %v1712_v43, %s2390_s7  ;;  %v1546_v40 = vmul.f32 %v1541_v51, %v3241_v16 }
 0x290   :  { %v1511_v14 = vmul.f32 %v1509_v7, %v2856_v19  ;;  %v1512_v59 = vmul.f32 %v1509_v7, %v3224_v36  ;;  %v1513_v39 = vmul.f32 %v1509_v7, %v3225_v58  ;;  %v1514_v30 = vmul.f32 %v1509_v7, %v3226_v27  ;;  %2089 = vmatprep.mubr.f32.mxu1 %v3229_v38  ;;  %v3245_v7 = vld [vmem:[#allocation19_spill] sm:$0xff]  ;;  %v1565_v36 = vpop.permute.xlu0 %1564 }
 0x292   :  { %v1579_v56 = vadd.f32 %v1519_v62, %v1511_v14  ;;  %v1580_v55 = vadd.f32 %v1520_v47, %v1512_v59  ;;  %v1581_v0 = vadd.f32 %v1521_v10, %v1513_v39  ;;  %v1582_v4 = vadd.f32 %v1522_v11, %v1514_v30  ;;  %v3246_v30 = vld [vmem:[#allocation22_spill] sm:$0xff] }
 0x293   :  { %1736 = vrot.lane.b32.xlu0 %v1713_v37, %s2390_s7  ;;  %1738 = vrot.lane.b32.xlu1 %v1714_v45, %s2390_s7  ;;  %v1567_v32 = vmul.f32 %v1565_v36, %v3246_v30 }
 0x294   :  { %v1525_v19 = vpop.permute.xlu1 %1524 }
 0x295   :  { %v1527_v5 = vmul.f32 %v1525_v19, %v2910_v24  ;;  %v1528_v22 = vmul.f32 %v1525_v19, %v2883_v29  ;;  %v1529_v48 = vmul.f32 %v1525_v19, %v3233_v63  ;;  %v1530_v53 = vmul.f32 %v1525_v19, %v2914_v42  ;;  %v3249_v19 = vld [vmem:[#allocation25_spill] sm:$0xff] }
 0x296   :  { %v1543_v29 = vmul.f32 %v1541_v51, %v3238_v54  ;;  %v1545_v42 = vmul.f32 %v1541_v51, %v3240_v20 }
 0x297   :  { %2103 = vperm.xlu0 %2272, %v3232_v17   ;;  %2108 = vperm.xlu1 %2273, %v51_v8   ;;  %v1570_v8 = vmul.f32 %v1565_v36, %v3249_v19 }
 0x299   :  { %v1533_v57 = vpop.permute.xlu1 %1532 }
 0x29a   :  { %v1535_v60 = vmul.f32 %v1533_v57, %v3234_v12  ;;  %v1536_v28 = vmul.f32 %v1533_v57, %v3235_v2  ;;  %v1537_v49 = vmul.f32 %v1533_v57, %v3236_v25  ;;  %v1538_v21 = vmul.f32 %v1533_v57, %v3237_v33 }
 0x29c   :  { %v1583_v15 = vadd.f32 %v1535_v60, %v1527_v5  ;;  %v1584_v61 = vadd.f32 %v1536_v28, %v1528_v22  ;;  %v1585_v23 = vadd.f32 %v1537_v49, %v1529_v48  ;;  %v1586_v24 = vadd.f32 %v1538_v21, %v1530_v53 }
 0x29e   :  { %v1595_v43 = vadd.f32 %v1583_v15, %v1579_v56  ;;  %v1596_v37 = vadd.f32 %v1584_v61, %v1580_v55  ;;  %v1597_v45 = vadd.f32 %v1585_v23, %v1581_v0  ;;  %v1598_v52 = vadd.f32 %v1586_v24, %v1582_v4  ;;  %v1549_v62 = vpop.permute.xlu1 %1548  ;;  %v3247_v56 = vld [vmem:[#allocation24_spill] sm:$0xff]  ;;  %v3248_v0 = vld [vmem:[#allocation23_spill] sm:$0xff] }
 0x29f   :  { %v1551_v47 = vmul.f32 %v1549_v62, %v3242_v18  ;;  %v1552_v10 = vmul.f32 %v1549_v62, %v3243_v46  ;;  %v1553_v11 = vmul.f32 %v1549_v62, %v3244_v6  ;;  %v1554_v14 = vmul.f32 %v1549_v62, %v3245_v7 }
 0x2a0   :  { %v1568_v55 = vmul.f32 %v1565_v36, %v3247_v56  ;;  %v1569_v4 = vmul.f32 %v1565_v36, %v3248_v0 }
 0x2a1   :  { %v1587_v59 = vadd.f32 %v1551_v47, %v1543_v29  ;;  %v1588_v58 = vadd.f32 %v1552_v10, %v1544_v31  ;;  %v1589_v39 = vadd.f32 %v1553_v11, %v1545_v42  ;;  %v1590_v27 = vadd.f32 %v1554_v14, %v1546_v40  ;;  %v3250_v42 = vld [vmem:[#allocation32_spill] sm:$0xff]  ;;  %v3251_v40 = vld [vmem:[#allocation30_spill] sm:$0xff] }
 0x2a2   :  { %v1283_v16 = vshra.s32 %v3250_v42, 6 }
 0x2a3   :  { %v1557_v17 = vpop.permute.xlu1 %1556 }
 0x2a4   :  { %v1559_v5 = vmul.f32 %v1557_v17, %v2960_v44  ;;  %v1560_v22 = vmul.f32 %v1557_v17, %v2935_v34  ;;  %v1561_v63 = vmul.f32 %v1557_v17, %v2939_v1  ;;  %v1562_v48 = vmul.f32 %v1557_v17, %v2964_v35 }
 0x2a5   :  { %vm1311_vm5 = vcmp.ge.s32.totalorder %v1283_v16, 1  ;;  %vm1315_vm6 = vcmp.lt.s32.totalorder %v1283_v16, 3 }
 0x2a6   :  { %v1591_v53 = vadd.f32 %v1567_v32, %v1559_v5  ;;  %v1592_v57 = vadd.f32 %v1568_v55, %v1560_v22  ;;  %v1593_v51 = vadd.f32 %v1569_v4, %v1561_v63  ;;  %v1594_v12 = vadd.f32 %v1570_v8, %v1562_v48 }
 0x2a8   :  { %v1599_v60 = vadd.f32 %v1591_v53, %v1587_v59  ;;  %v1600_v2 = vadd.f32 %v1592_v57, %v1588_v58  ;;  %v1601_v28 = vadd.f32 %v1593_v51, %v1589_v39  ;;  %v1602_v25 = vadd.f32 %v1594_v12, %v1590_v27  ;;  %v1573_v49 = vpop.permute.xlu1 %1572 }
 0x2a9   :  { %v1575_v33 = vmul.f32 %v1573_v49, %v3211_v3  ;;  %v1576_v21 = vmul.f32 %v1573_v49, %v3212_v41  ;;  %v1577_v44 = vmul.f32 %v1573_v49, %v3213_v26  ;;  %v1578_v34 = vmul.f32 %v1573_v49, %v3214_v13  ;;  %v3252_v26 = vld [vmem:[#allocation31_spill] sm:$0xff]  ;;  %v3253_v13 = vld [vmem:[#allocation33_spill] sm:$0xff] }
 0x2aa   :  { %v1603_v1 = vadd.f32 %v1599_v60, %v1595_v43  ;;  %v1604_v15 = vadd.f32 %v1600_v2, %v1596_v37  ;;  %v1605_v35 = vadd.f32 %v1601_v28, %v1597_v45  ;;  %v1606_v61 = vadd.f32 %v1602_v25, %v1598_v52 }
 0x2ab   :  { %v1284_v41 = vshra.s32 %v3251_v40, 6  ;;  %v1285_v18 = vshra.s32 %v3252_v26, 6  ;;  %v1286_v43 = vshra.s32 %v3253_v13, 6 }
 0x2ac   :  { %v1607_v23 = vadd.f32 %v1603_v1, %v1575_v33  ;;  %v1608_v24 = vadd.f32 %v1604_v15, %v1576_v21  ;;  %v1609_v54 = vadd.f32 %v1605_v35, %v1577_v44  ;;  %v1610_v29 = vadd.f32 %v1606_v61, %v1578_v34  ;;  %v43_v44 = vld [vmem:[#allocation5 + $0x28] sm:$0xff] }
 0x2ad   :  { %v1758_v9 = vpop.permute.xlu1 %1757  ;;  %vm3065_vm7 = vcmp.ge.s32.totalorder %v1284_v41, 1  ;;  %vm3071_vm8 = vcmp.ge.s32.totalorder %v1285_v18, 1  ;;  %vm3079_vm9 = vcmp.ge.s32.totalorder %v1286_v43, 1  ;;  %vm1316_vm10 = vcmp.lt.s32.totalorder %v1284_v41, 3 }
 0x2ae   :  { %vm1317_vm11 = vcmp.lt.s32.totalorder %v1285_v18, 3  ;;  %vm1318_vm12 = vcmp.lt.s32.totalorder %v1286_v43, 3 }
 0x2f8   :  { %v1718_v31 = vpop.permute.xlu1 %1717 }
 0x2f9   :  { %v1716_v20 = vpop.permute.xlu0 %1715 }
 0x2fa   :  { %v1726_v46 = vsel %vm1723_vm4, %v1716_v20, %v1718_v31 }
 0x2fb   :  { %v1729_v39 = vsel %vm3065_vm7, %v1726_v46, 0.0 }
 0x2fc   :  { %v1722_v3 = vpop.permute.xlu1 %1721 }
 0x2fd   :  { %v1720_v62 = vpop.permute.xlu0 %1719  ;;  %v1727_v37 = vsel %vm1723_vm4, %v1722_v3, %v1716_v20 }
 0x2fe   :  { %v1725_v6 = vsel %vm1723_vm4, %v1718_v31, %v1720_v62  ;;  %v1724_v14 = vsel %vm1723_vm4, %v1720_v62, %v1722_v3  ;;  %v1728_v36 = vsel %vm1311_vm5, %v1727_v37, 0.0 }
 0x2ff   :  { %v1730_v27 = vsel %vm3071_vm8, %v1725_v6, 0.0  ;;  %v1731_v56 = vsel %vm3079_vm9, %v1724_v14, 0.0 }
 0x301   :  { %v1733_v52 = vpop.permute.xlu0 %1732  ;;  %v1735_v47 = vpop.permute.xlu1 %1734 }
 0x302   :  { %v1742_v11 = vsel %vm1723_vm4, %v1733_v52, %v1735_v47 }
 0x303   :  { %v1744_v59 = vsel %vm1315_vm6, %v1742_v11, 0.0 }
 0x304   :  { %v1748_v58 = vadd.f32 %v1744_v59, %v1728_v36 }
 0x305   :  { %v1737_v30 = vpop.permute.xlu0 %1736  ;;  %v1739_v32 = vpop.permute.xlu1 %1738 }
 0x306   :  { %v1741_v55 = vsel %vm1723_vm4, %v1735_v47, %v1737_v30  ;;  %v1740_v0 = vsel %vm1723_vm4, %v1737_v30, %v1739_v32  ;;  %v1743_v4 = vsel %vm1723_vm4, %v1739_v32, %v1733_v52  ;;  %v1752_v19 = vadd.f32 %v1748_v58, %v1607_v23 }
 0x307   :  { %v1745_v8 = vsel %vm1316_vm10, %v1741_v55, 0.0  ;;  %v1746_v17 = vsel %vm1317_vm11, %v1740_v0, 0.0  ;;  %v1747_v5 = vsel %vm1318_vm12, %v1743_v4, 0.0 }
 0x308   :  { %v1749_v22 = vadd.f32 %v1745_v8, %v1729_v39  ;;  %v1750_v63 = vadd.f32 %v1746_v17, %v1730_v27  ;;  %v1751_v48 = vadd.f32 %v1747_v5, %v1731_v56  ;;  %v1760_v12 = vadd.f32 %v1758_v9, %v1752_v19 }
 0x30a   :  { %v1753_v53 = vadd.f32 %v1749_v22, %v1608_v24  ;;  %v1754_v57 = vadd.f32 %v1750_v63, %v1609_v54  ;;  %v1755_v51 = vadd.f32 %v1751_v48, %v1610_v29  ;;  %v1764_v21 = vmax.f32 %v1760_v12, 0.0 }
 0x30c   :  { %v1762_v60 = vadd.f32 %v1758_v9, %v1754_v57  ;;  %v1761_v2 = vadd.f32 %v1758_v9, %v1753_v53  ;;  %v1763_v28 = vadd.f32 %v1758_v9, %v1755_v51 }
 0x30e   :  { %v1765_v25 = vmax.f32 %v1761_v2, 0.0  ;;  %v1767_v49 = vmax.f32 %v1763_v28, 0.0  ;;  %v1766_v33 = vmax.f32 %v1762_v60, 0.0 }
 0x310   :  { %1948 = vmatprep.subr.mxu0 %v1765_v25  ;;  %2025 = vmatprep.subr.mxu1 %v1767_v49 }
 0x311   :  { %1949 = vmatpush1.msra.mxu0 %v1764_v21  ;;  %2026 = vmatpush1.msra.mxu1 %v1766_v33 }
 0x312   :  { %2194 = vmatmul.mubr.msk.f32.vlgmr.msra.gmra.mrb[16].mxu0 %vm3260_vm13, %v42_v50  ;;  %2196 = vmatmul.mubr.msk.f32.vlgmr.msra.gmra.mrb[16].mxu1 %vm3261_vm14, %v42_v50 }
 0x313   :  { %2018 = vmatprep.mubr.f32.mxu0 %v3229_v38  ;;  %2095 = vmatprep.mubr.f32.mxu1 %v3229_v38 }
 0x316   :  { %2195 = vmatmul.mubr.msk.f32.gmra.mrb[18].mxu0 %vm3262_vm15, %v43_v44  ;;  %2197 = vmatmul.mubr.msk.f32.gmra.mrb[18].mxu1 %vm3263_vm0, %v43_v44  ;;  %v2104_v34 = vpop.permute.xlu0 %2103  ;;  %v2109_v9 = vpop.permute.xlu1 %2108 }
 0x3e5   :  { %v2014_v1 = vpop.f32.mrb[16].mxu0  ;;  %v2091_v15 = vpop.f32.mrb[16].mxu1 }
 0x3e6   :  { %v2111_v35 = vadd.f32 %v2104_v34, %v2014_v1  ;;  %v2113_v61 = vadd.f32 %v2104_v34, %v2091_v15  ;;  %v2016_v23 = vpop.f32.mrb[17].mxu0  ;;  %v2093_v24 = vpop.f32.mrb[17].mxu1 }
 0x3e7   :  { %v2112_v54 = vadd.f32 %v2104_v34, %v2016_v23  ;;  %v2114_v29 = vadd.f32 %v2104_v34, %v2093_v24 }
 0x3e8   :  { %v2119_v31 = vmax.f32 %v2111_v35, 0.0  ;;  %v2121_v20 = vmax.f32 %v2113_v61, 0.0 }
 0x3e9   :  { %v2120_v42 = vmax.f32 %v2112_v54, 0.0  ;;  %v2122_v16 = vmax.f32 %v2114_v29, 0.0  ;;  %v2020_v38 = vpop.f32.mrb[18].mxu0  ;;  %v2097_v3 = vpop.f32.mrb[18].mxu1 }
 0x3ea   :  { %2127 = vst [vmem:[#allocation7] sm:$0xff] %v2119_v31  ;;  %2132 = vst [vmem:[#allocation7 + $0x20] sm:$0xff] %v2121_v20  ;;  %v2115_v40 = vadd.f32 %v2109_v9, %v2020_v38  ;;  %v2117_v41 = vadd.f32 %v2109_v9, %v2097_v3  ;;  %v2022_v62 = vpop.f32.mrb[19].mxu0  ;;  %v2099_v26 = vpop.f32.mrb[19].mxu1 }
 0x3eb   :  { %2128 = vst [vmem:[#allocation7 + $0x8] sm:$0xff] %v2120_v42  ;;  %2133 = vst [vmem:[#allocation7 + $0x28] sm:$0xff] %v2122_v16  ;;  %v2116_v18 = vadd.f32 %v2109_v9, %v2022_v62  ;;  %v2118_v13 = vadd.f32 %v2109_v9, %v2099_v26 }
 0x3ec   :  { %v2123_v43 = vmax.f32 %v2115_v40, 0.0  ;;  %v2125_v37 = vmax.f32 %v2117_v41, 0.0 }
 0x3ed   :  { %v2124_v45 = vmax.f32 %v2116_v18, 0.0  ;;  %v2126_v52 = vmax.f32 %v2118_v13, 0.0 }
 0x3ee   :  { %2129 = vst [vmem:[#allocation7 + $0x10] sm:$0xff] %v2123_v43  ;;  %2134 = vst [vmem:[#allocation7 + $0x30] sm:$0xff] %v2125_v37 }
 0x3ef   :  { %2130 = vst [vmem:[#allocation7 + $0x18] sm:$0xff] %v2124_v45  ;;  %2135 = vst [vmem:[#allocation7 + $0x38] sm:$0xff] %v2126_v52 }
 0x3f0   :  { %2339 = shalt.err (!%p2336_p6)
}
 0x3f1   :  { %s2340_s13 = scalar_lea.hbm %s3117_s2, 1024 }
 0x3f2   :  { %p2341_p7 = scmp.ne.s32.totalorder %s3117_s2, %s2340_s13  ;;  %p2344_p8 = scmp.lt.u32.totalorder %s2340_s13, %s3117_s2 }
 0x3f4   :  { %p2346_p9 = pnand %p2344_p8, %p2341_p7 }
 0x3f6   :  { %2349 = shalt.err (!%p2346_p9)
}
 0x3f7   :  { %s2392_s18 = smov 256   ;;  %s2393_s19 = smov 16  }
 0x3f8   :  { %2147 = dma.vmem_to_hbm [thread:$0]  %s2142_s9, 1024, %s3117_s2, [#allocation4], %s2392_s18, %s2392_s18, %s2393_s19  }
 0x3f9   :  { %2354 = dma.done.wait [#allocation4], 1024  }
 0x3fa   :  { %2355 = vsyncadd [#allocation4], 4294966272 }
 0x3fb   :  { %2151 = vsyncpa [#allocation3], 1 }
 0x3fc   :  { %2152 = vsyncpa [#allocation6], 1 }
 0x3fd   :  { %2153 = vsyncpa [#allocation4], 1 }

</bundles_post_ra>
